<compile_context>
chip_gen: v6e
topology: v6e:2x2x1
jax: 0.10.0
libtpu: 0.0.40
codegen_flags: <defaults>
</compile_context>

<pallas_src>
import jax
import jax.numpy as jnp
from jax.experimental import pallas as pl
from jax.experimental.pallas import tpu as pltpu

CHANNELS = 1
IMG_SIZE = 64
IMG_FEATS = CHANNELS * IMG_SIZE * IMG_SIZE   # 4096 (128-aligned)
N_CLASSES = 10
HIDDEN = 512
TK = 1024                                    # layer-1 K tile (4096 / 1024 = 4 steps)


def _round_up(n, m):
    return (n + m - 1) // m * m


def _leaky_relu(v):
    return jnp.where(v > 0, v, 0.2 * v)


def discriminator_kernel(x_ref,        # (TM, TK)      bf16  image-feature tile
                         eb_ref,       # (TM, HIDDEN)  f32   per-row emb@W1_emb + b1
                         w1_ref,       # (TK, HIDDEN)  bf16  layer-1 weight K-slice
                         w2_ref, b2_ref,
                         w3_ref, b3_ref,
                         w4_ref,       # (1, HIDDEN)   bf16  layer-4 weight row
                         b4_ref,       # (1, 1)        f32
                         o_ref,        # (TM, 1)       f32
                         acc_ref):     # (TM, HIDDEN)  f32 scratch
    k = pl.program_id(1)

    # Layer 1: K-split accumulation. Embedding contribution + b1 is the init.
    @pl.when(k == 0)
    def _():
        acc_ref[...] = eb_ref[...]

    acc_ref[...] += jnp.dot(x_ref[...], w1_ref[...],
                            preferred_element_type=jnp.float32)

    # Layers 2-4 only once the layer-1 reduction is complete.
    @pl.when(k == pl.num_programs(1) - 1)
    def _():
        h = _leaky_relu(acc_ref[...])                                  # f32
        h = _leaky_relu(jnp.dot(h.astype(jnp.bfloat16), w2_ref[...],
                                preferred_element_type=jnp.float32) + b2_ref[...])
        # Dropout(0.4) in eval mode is identity.
        h = _leaky_relu(jnp.dot(h.astype(jnp.bfloat16), w3_ref[...],
                                preferred_element_type=jnp.float32) + b3_ref[...])
        # Final 512 -> 1 layer on the VPU/XLU (skip a 1-column MXU pass).
        w4 = w4_ref[...].astype(jnp.float32)                           # (1, HIDDEN)
        o_ref[...] = jnp.sum(h * w4, axis=-1, keepdims=True) + b4_ref[...]


def discriminator_forward(x, labels, params):
    """x: (B, 1, 64, 64) float32 NCHW; labels: (B,) int32 -> (B, 1) float32."""
    B = x.shape[0]

    # Fold Embedding + the 10 label rows of W1 + b1 into a (10, 512) bias table
    # (tiny f32 matmul, done once per call in plain JAX), then gather per row.
    e_table = (jnp.dot(params["emb"], params["w1_emb"].astype(jnp.float32),
                       precision="highest")
               + params["b1"])                                          # (10, 512)
    e_bias = jnp.take(e_table, labels, axis=0)                          # (B, 512)

    # Image features: bf16 slab, 128-aligned K = 4096.
    x_flat = x.reshape(B, IMG_FEATS).astype(jnp.bfloat16)

    # Pad the batch to a sublane-group / tile multiple.
    TM = min(256, _round_up(B, 8))
    B_pad = _round_up(B, TM)
    pad = B_pad - B
    if pad:
        x_flat = jnp.pad(x_flat, ((0, pad), (0, 0)))
        e_bias = jnp.pad(e_bias, ((0, pad), (0, 0)))

    m_tiles = B_pad // TM
    k_tiles = IMG_FEATS // TK

    grid_spec = pltpu.PrefetchScalarGridSpec(
        num_scalar_prefetch=0,
        grid=(m_tiles, k_tiles),
        in_specs=[
            pl.BlockSpec((TM, TK), lambda m, k: (m, k)),          # x_flat
            pl.BlockSpec((TM, HIDDEN), lambda m, k: (m, 0)),      # e_bias
            pl.BlockSpec((TK, HIDDEN), lambda m, k: (k, 0)),      # w1_img slice
            pl.BlockSpec((HIDDEN, HIDDEN), lambda m, k: (0, 0)),  # w2 (resident)
            pl.BlockSpec((1, HIDDEN), lambda m, k: (0, 0)),       # b2
            pl.BlockSpec((HIDDEN, HIDDEN), lambda m, k: (0, 0)),  # w3 (resident)
            pl.BlockSpec((1, HIDDEN), lambda m, k: (0, 0)),       # b3
            pl.BlockSpec((1, HIDDEN), lambda m, k: (0, 0)),       # w4 row
            pl.BlockSpec((1, 1), lambda m, k: (0, 0)),            # b4
        ],
        out_specs=pl.BlockSpec((TM, 1), lambda m, k: (m, 0)),
        scratch_shapes=[pltpu.VMEM((TM, HIDDEN), jnp.float32)],
    )

    out = pl.pallas_call(
        discriminator_kernel,
        out_shape=jax.ShapeDtypeStruct((B_pad, 1), jnp.float32),
        grid_spec=grid_spec,
        compiler_params=pltpu.CompilerParams(
            dimension_semantics=("parallel", "arbitrary"),
            vmem_limit_bytes=32 << 20),
    )(x_flat, e_bias,
      params["w1_img"],
      params["w2"], params["b2"],
      params["w3"], params["b3"],
      params["w4"], params["b4"])

    return out[:B]


def init_params(key):
    """Synthetic parameters with the module's shapes.

    Linear weights are stored transposed relative to PyTorch nn.Linear, i.e.
    (in_features, out_features), in bfloat16; biases in float32. W1 is stored
    split: w1_emb = rows for the 10 embedding features, w1_img = rows for the
    4096 image features (concat([w1_emb, w1_img], 0) == linear1.weight.T).
    """
    ks = jax.random.split(key, 9)

    def lin(kw, fan_in, fan_out):
        scale = 1.0 / jnp.sqrt(jnp.float32(fan_in))
        w = jax.random.uniform(kw, (fan_in, fan_out), jnp.float32, -scale, scale)
        return w.astype(jnp.bfloat16)

    w1_full = lin(ks[1], N_CLASSES + IMG_FEATS, HIDDEN)
    params = {
        "emb": jax.random.normal(ks[0], (N_CLASSES, N_CLASSES), jnp.float32),
        "w1_emb": w1_full[:N_CLASSES],                          # (10, 512)  bf16
        "w1_img": w1_full[N_CLASSES:],                          # (4096, 512) bf16
        "b1": jax.random.uniform(ks[2], (1, HIDDEN), jnp.float32, -0.01, 0.01),
        "w2": lin(ks[3], HIDDEN, HIDDEN),
        "b2": jax.random.uniform(ks[4], (1, HIDDEN), jnp.float32, -0.01, 0.01),
        "w3": lin(ks[5], HIDDEN, HIDDEN),
        "b3": jax.random.uniform(ks[6], (1, HIDDEN), jnp.float32, -0.01, 0.01),
        "w4": lin(ks[7], HIDDEN, 1).reshape(1, HIDDEN),         # stored as a row
        "b4": jax.random.uniform(ks[8], (1, 1), jnp.float32, -0.01, 0.01),
    }
    return params


def reference_forward(x, labels, params):
    """Pure-JAX reference using the same bf16 operands / f32 accumulation."""
    B = x.shape[0]
    f32 = lambda a: a.astype(jnp.float32)
    hp = dict(precision="highest")

    emb = jnp.take(params["emb"], labels, axis=0)                       # (B, 10) f32
    xq = f32(x.reshape(B, -1).astype(jnp.bfloat16))                     # bf16-quantized
    h = (jnp.dot(emb, f32(params["w1_emb"]), **hp)
         + jnp.dot(xq, f32(params["w1_img"]), **hp)
         + params["b1"])
    h = _leaky_relu(h)
    h = _leaky_relu(jnp.dot(f32(h.astype(jnp.bfloat16)), f32(params["w2"]), **hp)
                    + params["b2"])
    h = _leaky_relu(jnp.dot(f32(h.astype(jnp.bfloat16)), f32(params["w3"]), **hp)
                    + params["b3"])
    return jnp.sum(h * f32(params["w4"]), axis=-1, keepdims=True) + params["b4"]


if __name__ == "__main__":
    key = jax.random.PRNGKey(0)
    k_params, k_x, k_lab = jax.random.split(key, 3)

    params = init_params(k_params)

    B = 2
    x = jax.random.normal(k_x, (B, CHANNELS, IMG_SIZE, IMG_SIZE), jnp.float32)
    labels = jax.random.randint(k_lab, (B,), 0, N_CLASSES, jnp.int32)

    fwd = jax.jit(discriminator_forward)
    out = fwd(x, labels, params)
    out = jax.block_until_ready(out)

    ref = reference_forward(x, labels, params)
    assert out.shape == (B, 1)
    assert jnp.allclose(out, ref, atol=1e-3, rtol=1e-3), (out, ref)

    print("KERNEL_OK")
</pallas_src>

<mosaic_0001>
module attributes {stable_mosaic.version = 11 : i64} {
  func.func @discriminator_kernel(%arg0: i32, %arg1: i32, %arg2: memref<8x1024xbf16, #tpu.memory_space<vmem>>, %arg3: memref<8x512xf32, #tpu.memory_space<vmem>>, %arg4: memref<1024x512xbf16, #tpu.memory_space<vmem>>, %arg5: memref<512x512xbf16, #tpu.memory_space<vmem>>, %arg6: memref<1x512xf32, #tpu.memory_space<vmem>>, %arg7: memref<512x512xbf16, #tpu.memory_space<vmem>>, %arg8: memref<1x512xf32, #tpu.memory_space<vmem>>, %arg9: memref<1x512xbf16, #tpu.memory_space<vmem>>, %arg10: memref<1x1xf32, #tpu.memory_space<vmem>>, %arg11: memref<8x1xf32, #tpu.memory_space<vmem>>, %arg12: memref<8x512xf32, #tpu.memory_space<vmem>>) attributes {dimension_semantics = [#tpu.dimension_semantics<parallel>, #tpu.dimension_semantics<arbitrary>], iteration_bounds = array<i64: 1, 4>, scalar_prefetch = 0 : i64, scratch_operands = 1 : i64, tpu.core_type = #tpu.core_type<tc>, window_params = [{transform_indices = @transform_0, window_bounds = array<i64: 8, 1024>}, {transform_indices = @transform_1, window_bounds = array<i64: 8, 512>}, {transform_indices = @transform_2, window_bounds = array<i64: 1024, 512>}, {pipeline_mode = #tpu.pipeline_mode<synchronous>, transform_indices = @transform_3, window_bounds = array<i64: 512, 512>}, {pipeline_mode = #tpu.pipeline_mode<synchronous>, transform_indices = @transform_4, window_bounds = array<i64: 1, 512>}, {pipeline_mode = #tpu.pipeline_mode<synchronous>, transform_indices = @transform_5, window_bounds = array<i64: 512, 512>}, {pipeline_mode = #tpu.pipeline_mode<synchronous>, transform_indices = @transform_6, window_bounds = array<i64: 1, 512>}, {pipeline_mode = #tpu.pipeline_mode<synchronous>, transform_indices = @transform_7, window_bounds = array<i64: 1, 512>}, {pipeline_mode = #tpu.pipeline_mode<synchronous>, transform_indices = @transform_8, window_bounds = array<i64: 1, 1>}, {transform_indices = @transform_9, window_bounds = array<i64: 8, 1>}]} {
    %c0_i32 = arith.constant 0 : i32
    %0 = arith.cmpi eq, %arg1, %c0_i32 : i32
    %1 = arith.extui %0 : i1 to i32
    %c0_i32_0 = arith.constant 0 : i32
    %2 = arith.cmpi ne, %1, %c0_i32_0 : i32
    scf.if %2 {
      %c0_9 = arith.constant 0 : index
      %c0_10 = arith.constant 0 : index
      %12 = vector.load %arg3[%c0_9, %c0_10] : memref<8x512xf32, #tpu.memory_space<vmem>>, vector<8x512xf32>
      %c0_11 = arith.constant 0 : index
      %c0_12 = arith.constant 0 : index
      %13 = vector.load %arg12[%c0_11, %c0_12] : memref<8x512xf32, #tpu.memory_space<vmem>>, vector<8x512xf32>
      tpu.vector_store %arg12[%c0_11, %c0_12], %12 {strides = array<i32>} : memref<8x512xf32, #tpu.memory_space<vmem>>, vector<8x512xf32>,
    } else {
    }
    %c0 = arith.constant 0 : index
    %c0_1 = arith.constant 0 : index
    %3 = vector.load %arg12[%c0, %c0_1] : memref<8x512xf32, #tpu.memory_space<vmem>>, vector<8x512xf32>
    %c0_2 = arith.constant 0 : index
    %c0_3 = arith.constant 0 : index
    %4 = vector.load %arg2[%c0_2, %c0_3] : memref<8x1024xbf16, #tpu.memory_space<vmem>>, vector<8x1024xbf16>
    %c0_4 = arith.constant 0 : index
    %c0_5 = arith.constant 0 : index
    %5 = vector.load %arg4[%c0_4, %c0_5] : memref<1024x512xbf16, #tpu.memory_space<vmem>>, vector<1024x512xbf16>
    %cst = arith.constant dense<0.000000e+00> : vector<8x512xf32>
    %6 = tpu.matmul %4, %5, %cst {dimension_numbers = #tpu.dot_dimension_numbers<[1], [0], [0], [1], [0, 0, 1, 1], [], []>} : vector<8x1024xbf16>, vector<1024x512xbf16>, vector<8x512xf32> -> vector<8x512xf32>
    %7 = arith.addf %3, %6 : vector<8x512xf32>
    %c0_6 = arith.constant 0 : index
    %c0_7 = arith.constant 0 : index
    %8 = vector.load %arg12[%c0_6, %c0_7] : memref<8x512xf32, #tpu.memory_space<vmem>>, vector<8x512xf32>
    tpu.vector_store %arg12[%c0_6, %c0_7], %7 {strides = array<i32>} : memref<8x512xf32, #tpu.memory_space<vmem>>, vector<8x512xf32>,
    %c3_i32 = arith.constant 3 : i32
    %9 = arith.cmpi eq, %arg1, %c3_i32 : i32
    %10 = arith.extui %9 : i1 to i32
    %c0_i32_8 = arith.constant 0 : i32
    %11 = arith.cmpi ne, %10, %c0_i32_8 : i32
    scf.if %11 {
      %c0_9 = arith.constant 0 : index
      %c0_10 = arith.constant 0 : index
      %12 = vector.load %arg12[%c0_9, %c0_10] : memref<8x512xf32, #tpu.memory_space<vmem>>, vector<8x512xf32>
      %cst_11 = arith.constant 0.000000e+00 : f32
      %13 = vector.broadcast %cst_11 : f32 to vector<8x512xf32>
      %14 = arith.cmpf ogt, %12, %13 : vector<8x512xf32>
      %cst_12 = arith.constant 2.000000e-01 : f32
      %15 = vector.broadcast %cst_12 : f32 to vector<8x512xf32>
      %16 = arith.mulf %15, %12 : vector<8x512xf32>
      %17 = arith.select %14, %12, %16 : vector<8x512xi1>, vector<8x512xf32>
      %18 = arith.truncf %17 : vector<8x512xf32> to vector<8x512xbf16>
      %c0_13 = arith.constant 0 : index
      %c0_14 = arith.constant 0 : index
      %19 = vector.load %arg5[%c0_13, %c0_14] : memref<512x512xbf16, #tpu.memory_space<vmem>>, vector<512x512xbf16>
      %cst_15 = arith.constant dense<0.000000e+00> : vector<8x512xf32>
      %20 = tpu.matmul %18, %19, %cst_15 {dimension_numbers = #tpu.dot_dimension_numbers<[1], [0], [0], [1], [0, 0, 1, 1], [], []>} : vector<8x512xbf16>, vector<512x512xbf16>, vector<8x512xf32> -> vector<8x512xf32>
      %c0_16 = arith.constant 0 : index
      %c0_17 = arith.constant 0 : index
      %21 = vector.load %arg6[%c0_16, %c0_17] : memref<1x512xf32, #tpu.memory_space<vmem>>, vector<1x512xf32>
      %22 = vector.broadcast %21 : vector<1x512xf32> to vector<8x512xf32>
      %23 = arith.addf %20, %22 : vector<8x512xf32>
      %cst_18 = arith.constant 0.000000e+00 : f32
      %24 = vector.broadcast %cst_18 : f32 to vector<8x512xf32>
      %25 = arith.cmpf ogt, %23, %24 : vector<8x512xf32>
      %cst_19 = arith.constant 2.000000e-01 : f32
      %26 = vector.broadcast %cst_19 : f32 to vector<8x512xf32>
      %27 = arith.mulf %26, %23 : vector<8x512xf32>
      %28 = arith.select %25, %23, %27 : vector<8x512xi1>, vector<8x512xf32>
      %29 = arith.truncf %28 : vector<8x512xf32> to vector<8x512xbf16>
      %c0_20 = arith.constant 0 : index
      %c0_21 = arith.constant 0 : index
      %30 = vector.load %arg7[%c0_20, %c0_21] : memref<512x512xbf16, #tpu.memory_space<vmem>>, vector<512x512xbf16>
      %cst_22 = arith.constant dense<0.000000e+00> : vector<8x512xf32>
      %31 = tpu.matmul %29, %30, %cst_22 {dimension_numbers = #tpu.dot_dimension_numbers<[1], [0], [0], [1], [0, 0, 1, 1], [], []>} : vector<8x512xbf16>, vector<512x512xbf16>, vector<8x512xf32> -> vector<8x512xf32>
      %c0_23 = arith.constant 0 : index
      %c0_24 = arith.constant 0 : index
      %32 = vector.load %arg8[%c0_23, %c0_24] : memref<1x512xf32, #tpu.memory_space<vmem>>, vector<1x512xf32>
      %33 = vector.broadcast %32 : vector<1x512xf32> to vector<8x512xf32>
      %34 = arith.addf %31, %33 : vector<8x512xf32>
      %cst_25 = arith.constant 0.000000e+00 : f32
      %35 = vector.broadcast %cst_25 : f32 to vector<8x512xf32>
      %36 = arith.cmpf ogt, %34, %35 : vector<8x512xf32>
      %cst_26 = arith.constant 2.000000e-01 : f32
      %37 = vector.broadcast %cst_26 : f32 to vector<8x512xf32>
      %38 = arith.mulf %37, %34 : vector<8x512xf32>
      %39 = arith.select %36, %34, %38 : vector<8x512xi1>, vector<8x512xf32>
      %c0_27 = arith.constant 0 : index
      %c0_28 = arith.constant 0 : index
      %40 = vector.load %arg9[%c0_27, %c0_28] : memref<1x512xbf16, #tpu.memory_space<vmem>>, vector<1x512xbf16>
      %41 = arith.extf %40 : vector<1x512xbf16> to vector<1x512xf32>
      %42 = vector.broadcast %41 : vector<1x512xf32> to vector<8x512xf32>
      %43 = arith.mulf %39, %42 : vector<8x512xf32>
      %cst_29 = arith.constant dense<0.000000e+00> : vector<8xf32>
      %44 = vector.multi_reduction <add>, %43, %cst_29 [1] : vector<8x512xf32> to vector<8xf32>
      %45 = vector.shape_cast %44 : vector<8xf32> to vector<8x1xf32>
      %c0_30 = arith.constant 0 : index
      %c0_31 = arith.constant 0 : index
      %46 = vector.load %arg10[%c0_30, %c0_31] : memref<1x1xf32, #tpu.memory_space<vmem>>, vector<1x1xf32>
      %47 = vector.broadcast %46 : vector<1x1xf32> to vector<8x1xf32>
      %48 = arith.addf %45, %47 : vector<8x1xf32>
      %c0_32 = arith.constant 0 : index
      %c0_33 = arith.constant 0 : index
      %49 = vector.load %arg11[%c0_32, %c0_33] : memref<8x1xf32, #tpu.memory_space<vmem>>, vector<8x1xf32>
      tpu.vector_store %arg11[%c0_32, %c0_33], %48 {strides = array<i32>} : memref<8x1xf32, #tpu.memory_space<vmem>>, vector<8x1xf32>,
    } else {
    }
    return
  }
  func.func @transform_0(%arg0: i32, %arg1: i32) -> (i32, i32) {
    %c0_i32 = arith.constant 0 : i32
    return %arg0, %arg1 : i32, i32
  }
  func.func @transform_1(%arg0: i32, %arg1: i32) -> (i32, i32) {
    %c0_i32 = arith.constant 0 : i32
    %c0_i32_0 = arith.constant 0 : i32
    return %arg0, %c0_i32 : i32, i32
  }
  func.func @transform_2(%arg0: i32, %arg1: i32) -> (i32, i32) {
    %c0_i32 = arith.constant 0 : i32
    %c0_i32_0 = arith.constant 0 : i32
    return %arg1, %c0_i32 : i32, i32
  }
  func.func @transform_3(%arg0: i32, %arg1: i32) -> (i32, i32) {
    %c0_i32 = arith.constant 0 : i32
    %c0_i32_0 = arith.constant 0 : i32
    %c0_i32_1 = arith.constant 0 : i32
    return %c0_i32, %c0_i32_0 : i32, i32
  }
  func.func @transform_4(%arg0: i32, %arg1: i32) -> (i32, i32) {
    %c0_i32 = arith.constant 0 : i32
    %c0_i32_0 = arith.constant 0 : i32
    %c0_i32_1 = arith.constant 0 : i32
    return %c0_i32, %c0_i32_0 : i32, i32
  }
  func.func @transform_5(%arg0: i32, %arg1: i32) -> (i32, i32) {
    %c0_i32 = arith.constant 0 : i32
    %c0_i32_0 = arith.constant 0 : i32
    %c0_i32_1 = arith.constant 0 : i32
    return %c0_i32, %c0_i32_0 : i32, i32
  }
  func.func @transform_6(%arg0: i32, %arg1: i32) -> (i32, i32) {
    %c0_i32 = arith.constant 0 : i32
    %c0_i32_0 = arith.constant 0 : i32
    %c0_i32_1 = arith.constant 0 : i32
    return %c0_i32, %c0_i32_0 : i32, i32
  }
  func.func @transform_7(%arg0: i32, %arg1: i32) -> (i32, i32) {
    %c0_i32 = arith.constant 0 : i32
    %c0_i32_0 = arith.constant 0 : i32
    %c0_i32_1 = arith.constant 0 : i32
    return %c0_i32, %c0_i32_0 : i32, i32
  }
  func.func @transform_8(%arg0: i32, %arg1: i32) -> (i32, i32) {
    %c0_i32 = arith.constant 0 : i32
    %c0_i32_0 = arith.constant 0 : i32
    %c0_i32_1 = arith.constant 0 : i32
    return %c0_i32, %c0_i32_0 : i32, i32
  }
  func.func @transform_9(%arg0: i32, %arg1: i32) -> (i32, i32) {
    %c0_i32 = arith.constant 0 : i32
    %c0_i32_0 = arith.constant 0 : i32
    return %arg0, %c0_i32 : i32, i32
  }
}

</mosaic_0001>

<bundles_post_ra>
// kernel: discriminator_forward.1
= control target key start
LH: loop header
LB: loop body
LE: loop exit
PB: predicated region body
PF: predicated region fallthrough
CT: control target
= control target key end

     0   :  { %s6857_s0 = inlined_call_operand.vmem [shape: bf16[8,4096], index: 0, kind: input, shape index: {}]   ;;  %s6858_s1 = inlined_call_operand.vmem [shape: f32[8,512], index: 1, kind: input, shape index: {}]   ;;  %s6859_s2 = inlined_call_operand.hbm [shape: bf16[4096,512], index: 2, kind: input, shape index: {}]   ;;  %s6860_s3 = inlined_call_operand.hbm [shape: bf16[512,512], index: 3, kind: input, shape index: {}]   ;;  %s6861_s4 = inlined_call_operand.hbm [shape: f32[1,512], index: 4, kind: input, shape index: {}]   ;;  %s6862_s5 = inlined_call_operand.hbm [shape: bf16[512,512], index: 5, kind: input, shape index: {}]   ;;  %s6863_s6 = inlined_call_operand.hbm [shape: f32[1,512], index: 6, kind: input, shape index: {}]   ;;  %s6864_s7 = inlined_call_operand.hbm [shape: bf16[1,512], index: 7, kind: input, shape index: {}]   ;;  %s6865_s8 = inlined_call_operand.<no memory space> [shape: f32[1,1], index: 8, kind: input, shape index: {}]   ;;  %s6866_s9 = inlined_call_operand.vmem [shape: f32[8,1], index: 9, kind: output, shape index: {}]  }
   0x1   :  { %6872 = sst [smem:[#allocation18_spill]] %s6860_s3  ;;  %v14_v0 = vstv %s6865_s8 }
   0x2   :  { %6873 = sst [smem:[#allocation19_spill]] %s6861_s4  ;;  %15 = vst [vmem:[#allocation3] sm:$0x1] %v14_v0 }
   0x3   :  { %16 = vsyncpa [#allocation5], 0 }
   0x4   :  { %18 = vsyncpa [#allocation5 + $0x1], 0 }
   0x5   :  { %19 = vsyncpa [#allocation7], 0 }
   0x6   :  { %20 = vsyncpa [#allocation10], 0 }
   0x7   :  { %21 = vsyncpa [#allocation13], 0  ;;  %s6296_s11 = smov 0   ;;  %s6298_s12 = smov 0  }
   0x8   :  { %s6300_s13 = smov 0   ;;  %s6302_s14 = smov 0  }
   0x9   :  { %s6304_s15 = smov 0   ;;  %s6306_s16 = smov 0  }
   0xa LB: > { %s4579_s8 = sadd.s32 4294967295, %s6233_s16   ;;  %p4580_p0 = scmp.ge.s32.totalorder %s6233_s16, 1  ;;  %s6233_s16 = sphi %s6306_s16, %s27_s16   ;;  %s6229_s15 = sphi %s6304_s15, %s6892_s15   ;;  %s6225_s14 = sphi %s6302_s14, %s6891_s14   ;;  %s6221_s13 = sphi %s6300_s13, %s6890_s13   ;;  %s6217_s12 = sphi %s6298_s12, %s6889_s12   ;;  %s6213_s11 = sphi %s6296_s11, %s6888_s11  }
   0xb   : > { %p6328_p1 = scmp.eq.s32.totalorder %s4579_s8, 0  ;;  %p276_p2 = scmp.lt.s32.totalorder %s6233_s16, 5 }
   0xc   : > { %s6235_s19 = smov [#allocation6]   ;;  %s6236_s22 = smov [#allocation9]  }
   0xd   : > { %s6874_s17 = scalar_select %p6328_p1, 1, 0 }
   0xe   : > { %p6333_p3 = pnand %p4580_p0, %p276_p2  ;;  %s296_s20 = sshll.u32 %s6235_s19, 4  ;;  %s297_s20 = int_to_ptr.vmem [resolvable:$true] %s296_s20 }
   0xf   : > { %s320_s23 = sshll.u32 %s6236_s22, 4  ;;  %s6237_s24 = smov [#allocation8]   ;;  %s321_s23 = int_to_ptr.vmem [resolvable:$true] %s320_s23 }
  0x10   : > { %s6875_s18 = scalar_select %p6333_p3, 1, 0 }
  0x11   : > { %p5151_p4 = pneg %p6333_p3  ;;  %s310_s25 = sshll.u32 %s6237_s24, 4  ;;  %s311_s25 = int_to_ptr.vmem [resolvable:$true] %s310_s25 }
  0x12   : > { %s6024_s27 = scalar_lea.vmem %s297_s20, 16384  ;;  %p6032_p10 = scmp.lt.s32.totalorder %s297_s20, %s297_s20 }
  0x13   : > { %p6341_p5 = pnand %p5151_p4, %p6328_p1  ;;  %p6025_p7 = scmp.ne.s32.totalorder %s297_s20, %s6024_s27 }
  0x14   : > { %p6033_p11 = scmp.lt.s32.totalorder %s6024_s27, %s6024_s27 }
  0x15   : > { %p6347_p6 = pneg %p6341_p5 }
  0x16   : > { %p6034_p12 = por %p6033_p11, %p6032_p10 }
  0x17   : > { %p6027_p8 = pnand %p6025_p7, %p6347_p6 }
  0x19   : > { %p6028_p9 = pneg %p6027_p8 }
  0x1b   : > { %p6035_p13 = pnand %p6034_p12, %p6028_p9 }
  0x1d   : > { %6038 = shalt.err (!%p6035_p13)
}
  0x1e   : > { %s6870_s28 = smov 256   ;;  %s6871_s29 = smov 16  }
  0x1f   : > { %s6878_s3 = sld [smem:[#allocation18_spill]]  ;;  %s6050_s8 = scalar_lea.vmem %s321_s23, 16384 }
  0x20   : > { %p6051_p0 = scmp.ne.s32.totalorder %s321_s23, %s6050_s8  ;;  %p6058_p7 = scmp.lt.s32.totalorder %s321_s23, %s321_s23 }
  0x21   : > { %p6059_p8 = scmp.lt.s32.totalorder %s6050_s8, %s6050_s8 }
  0x22   : > { %p6053_p2 = pnand %p6051_p0, %p6347_p6 }
  0x23   : > { %p6060_p9 = por %p6059_p8, %p6058_p7 }
  0x24   : > { %p6054_p4 = pneg %p6053_p2 }
  0x25   : > { %5154 = dma.hbm_to_vmem [thread:$0]  (!%p6341_p5), %s6878_s3, 16384, %s297_s20, [#allocation7], %s6870_s28, %s6870_s28, %s6871_s29  }
  0x26   : > { %p6061_p10 = pnand %p6060_p9, %p6054_p4 }
  0x28   : > { %6064 = shalt.err (!%p6061_p10)
}
  0x29   : > { %5160 = dma.hbm_to_vmem [thread:$0]  (!%p6341_p5), %s6862_s5, 16384, %s321_s23, [#allocation10], %s6870_s28, %s6870_s28, %s6871_s29  }
  0x2a   : > { %s6076_s20 = scalar_lea.vmem %s311_s25, 64  ;;  %p6084_p0 = scmp.lt.s32.totalorder %s311_s25, %s311_s25 }
  0x2b   : > { %p6077_p11 = scmp.ne.s32.totalorder %s311_s25, %s6076_s20  ;;  %p6085_p2 = scmp.lt.s32.totalorder %s6076_s20, %s6076_s20 }
  0x2d   : > { %p6079_p12 = pnand %p6077_p11, %p6347_p6  ;;  %p6086_p4 = por %p6085_p2, %p6084_p0 }
  0x2f   : > { %p6080_p13 = pneg %p6079_p12 }
  0x31   : > { %p6087_p7 = pnand %p6086_p4, %p6080_p13 }
  0x33   : > { %6090 = shalt.err (!%p6087_p7)
}
  0x34   : > { %s6879_s4 = sld [smem:[#allocation19_spill]]  ;;  %s6240_s30 = smov [#allocation11]  }
  0x35   : > { %s334_s23 = sshll.u32 %s6240_s30, 4  ;;  %s6241_s10 = smov [#allocation12]   ;;  %s335_s23 = int_to_ptr.vmem [resolvable:$true] %s334_s23 }
  0x36   : > { %s345_s8 = sshll.u32 %s6241_s10, 4  ;;  %s6102_s19 = scalar_lea.vmem %s335_s23, 64  ;;  %s346_s8 = int_to_ptr.vmem [resolvable:$true] %s345_s8 }
  0x37   : > { %p6103_p8 = scmp.ne.s32.totalorder %s335_s23, %s6102_s19  ;;  %p6110_p11 = scmp.lt.s32.totalorder %s335_s23, %s335_s23 }
  0x38   : > { %p6111_p12 = scmp.lt.s32.totalorder %s6102_s19, %s6102_s19 }
  0x39   : > { %p6105_p9 = pnand %p6103_p8, %p6347_p6 }
  0x3a   : > { %5157 = dma.hbm_to_vmem [thread:$0]  (!%p6341_p5), %s6879_s4, 64, %s311_s25, [#allocation7]  }
  0x3b   : > { %p6106_p10 = pneg %p6105_p9  ;;  %p6112_p13 = por %p6111_p12, %p6110_p11 }
  0x3d   : > { %p6113_p0 = pnand %p6112_p13, %p6106_p10 }
  0x3f   : > { %6116 = shalt.err (!%p6113_p0)
}
  0x40   : > { %5163 = dma.hbm_to_vmem [thread:$0]  (!%p6341_p5), %s6863_s6, 64, %s335_s23, [#allocation10]  }
  0x41   : > { %s6128_s25 = scalar_lea.vmem %s346_s8, 64  ;;  %p6136_p8 = scmp.lt.s32.totalorder %s346_s8, %s346_s8 }
  0x42   : > { %p6129_p2 = scmp.ne.s32.totalorder %s346_s8, %s6128_s25  ;;  %p6137_p9 = scmp.lt.s32.totalorder %s6128_s25, %s6128_s25 }
  0x44   : > { %p6131_p4 = pnand %p6129_p2, %p6347_p6  ;;  %p6138_p3 = por %p6137_p9, %p6136_p8 }
  0x46   : > { %p6132_p7 = pneg %p6131_p4 }
  0x48   : > { %p6139_p1 = pnand %p6138_p3, %p6132_p7 }
  0x4a   : > { %6142 = shalt.err (!%p6139_p1)
}
  0x4b   : > { %5166 = dma.hbm_to_vmem [thread:$0]  (!%p6341_p5), %s6864_s7, 64, %s346_s8, [#allocation13]  }
  0x4c   : > { %s36_s26 = sadd.s32 1, %s6229_s15  ;;  %s100_s21 = sadd.s32 1, %s6221_s13 }
  0x4d   : > { %p37_p1 = scmp.ge.s32.totalorder %s36_s26, 4  ;;  %p107_p3 = scmp.ne.s32.totalorder %s6221_s13, %s6217_s12 }
  0x4e   : > { %p108_p6 = scmp.eq.s32.totalorder %s6233_s16, 0  ;;  %p113_p11 = scmp.ne.s32.totalorder %s6217_s12, %s6213_s11 }
  0x4f   : > { %s6894_s26 = smov (%p37_p1, %s36_s26), 0  ;;  %p5176_p12 = scmp.lt.s32.totalorder %s6233_s16, 4 }
  0x50   : > { %p6399_p10 = por %p108_p6, %p107_p3  ;;  %s97_s23 = ssub.s32 %s6229_s15, %s6894_s26 }
  0x51   : > { %p98_p13 = scmp.eq.s32.totalorder %s97_s23, 0  ;;  %p6881_p0 = scmp.ne.s32.totalorder %s6874_s17, 0 }
  0x52   : > { %s372_s8 = sand.u32 1, %s6221_s13   ;;  %s5128_s19 = sshll.u32 %s6229_s15, 15 }
  0x53   : > { %p6410_p2 = por %p6881_p0, %p113_p11  ;;  %s4588_s20 = sshll.u32 %s372_s8, 11 }
  0x54   : > { %s6417_s22 = scalar_select %p98_p13, %s6221_s13, %s100_s21  }
  0x55   : > { %s383_s27 = scalar_lea.hbm %s6859_s2, %s5128_s19  ;;  %s376_s28 = scalar_lea.vmem [#allocation4], %s4588_s20 }
  0x56   : > { %s384_s29 = sshll.u32 %s376_s28, 4  ;;  %p6424_p5 = pnand %p5176_p12, %p6399_p10  ;;  %s385_s29 = int_to_ptr.vmem [resolvable:$true] %s384_s29 }
  0x57   : > { %s373_s23 = scalar_lea.sflag [#allocation5], %s372_s8  ;;  %s6156_s3 = scalar_lea.vmem %s385_s29, 32768 }
  0x58   : > { %p6145_p4 = pneg %p6424_p5  ;;  %p6157_p7 = scmp.ne.s32.totalorder %s385_s29, %s6156_s3 }
  0x59   : > { %s6242_s21 = smov [#allocation4]  }
  0x5a   : > { %p6159_p8 = pnand %p6157_p7, %p6145_p4  ;;  %s6161_s4 = sshll.u32 %s6242_s21, 4  ;;  %s6162_s4 = int_to_ptr.vmem [resolvable:$false] %s6161_s4 }
  0x5b   : > { %s6163_s19 = scalar_lea.vmem %s6162_s4, 65536  ;;  %p6164_p1 = scmp.lt.s32.totalorder %s385_s29, %s6162_s4 }
  0x5c   : > { %p6160_p9 = pneg %p6159_p8  ;;  %p6165_p3 = scmp.lt.s32.totalorder %s6163_s19, %s6156_s3 }
  0x5e   : > { %p6166_p6 = por %p6165_p3, %p6164_p1 }
  0x60   : > { %p6167_p10 = pnand %p6166_p6, %p6160_p9 }
  0x62   : > { %6170 = shalt.err (!%p6167_p10)
}
  0x63   : > { %s6884_s28 = smov 16   ;;  %s6885_s30 = smov 256  }
  0x64   : > { %5170 = dma.hbm_to_vmem [thread:$0]  (!%p6424_p5), %s383_s27, 32768, %s385_s29, %s373_s23, %s6885_s30, %s6885_s30, %s6884_s28  }
  0x65   : > { %p6886_p11 = scmp.ne.s32.totalorder %s6875_s18, 0 }
  0x66   : > { %s398_s8 = sand.u32 (!%p6886_p11), 1, %s6217_s12  }
  0x67   : > { %396 = sbr.rel (%p6886_p11) target bundleno = 1328 (0x530), region = 56  ;;  %s4593_s20 = sshll.u32 (!%p6886_p11), %s398_s8, 11 }
  0x68   : > { %s399_s25 = scalar_lea.sflag (!%p6886_p11), [#allocation5], %s398_s8  ;;  %s6438_s24 = scalar_lea.vmem (!%p6886_p11), [#allocation4], %s4593_s20 }
  0x6c   : > { %6196 = dma.done.wait (%p6410_p2), %s399_s25, 32768  }
  0x6d   : > { %6198 = vsyncadd (%p6410_p2), %s399_s25, 4294934528  ;;  %p6887_p12 = scmp.ne.s32.totalorder %s6874_s17, 0 }
  0x6f   : > { %6200 = dma.done.wait (%p6887_p12), [#allocation7], 16448  }
  0x70   : > { %6202 = vsyncadd (%p6887_p12), [#allocation7], 4294950848 }
  0x71   : > { %6204 = dma.done.wait (%p6887_p12), [#allocation10], 16448  }
  0x72   : > { %6206 = vsyncadd (%p6887_p12), [#allocation10], 4294950848 }
  0x73   : > { %6208 = dma.done.wait (%p6887_p12), [#allocation13], 64  }
  0x74   : > { %6210 = vsyncadd (%p6887_p12), [#allocation13], 4294967232  ;;  %s4599_s3 = sshll.u32 %s6225_s14, 3  ;;  %p4601_p0 = scmp.ne.s32.totalorder %s6225_s14, 0 }
  0x75   : > { %p473_p13 = scmp.lt.s32.totalorder %s4599_s3, 31 }
  0x76   : > { %493 = sbr.rel (%p4601_p0) target bundleno = 126 (0x7e), region = 84 }
  0x77   : > { %s6896_s3 = smov (!%p473_p13, %s4599_s3), 31 }
  0x78   : > { %s4600_s4 = sshll.u32 %s6896_s3, 2 }
  0x79   : > { %s6460_s10 = scalar_lea.vmem %s6857_s0, %s4600_s4 }
  0x7b   : > { %v494_v1 = vld [vmem:[%s6858_s1] sm:$0xff]  ;;  %v495_v2 = vld [vmem:[%s6858_s1 + $0x8] sm:$0xff]  ;;  %v496_v3 = vld [vmem:[%s6858_s1 + $0x10] sm:$0xff] }
  0x7c   : > { %498 = vst [vmem:[#allocation2 + $0x10] sm:$0xff] %v494_v1  ;;  %499 = vst [vmem:[#allocation2] sm:$0xff] %v495_v2  ;;  %v497_v4 = vld [vmem:[%s6858_s1 + $0x18] sm:$0xff] }
  0x7d   : > { %500 = vst [vmem:[#allocation2 + $0x18] sm:$0xff] %v496_v3  ;;  %501 = vst [vmem:[#allocation2 + $0x8] sm:$0xff] %v497_v4 }
  0x7e PF: > { %v5237_v5 = vld [vmem:[%s6438_s24 + $0xe4] ss:$16 sps:$4 sm:$0xff]   ;;  %v5241_v7 = vld [vmem:[%s6438_s24 + $0xe0] ss:$16 sps:$4 sm:$0xff]   ;;  %p4866_p2 = scmp.ne.s32.totalorder %s6225_s14, 3 }
  0x7f   : > { %v5239_v6 = vld [vmem:[%s6438_s24 + $0x2e4] ss:$16 sps:$4 sm:$0xff]   ;;  %2074 = vmatprep.subr.bf16.mxu0 %v5237_v5  ;;  %v5242_v8 = vld [vmem:[%s6438_s24 + $0x2e0] ss:$16 sps:$4 sm:$0xff]  }
  0x80   : > { %2115 = vmatprep.subr.bf16.mxu1 %v5239_v6  ;;  %v5243_v9 = vld [vmem:[%s6438_s24 + $0xc4] ss:$16 sps:$4 sm:$0xff]   ;;  %2075 = vmatpush1.bf16.msra.mxu0 %v5241_v7  ;;  %v5247_v11 = vld [vmem:[%s6438_s24 + $0xc0] ss:$16 sps:$4 sm:$0xff]  }
  0x81   : > { %2116 = vmatpush1.bf16.msra.mxu1 %v5242_v8  ;;  %v5245_v10 = vld [vmem:[%s6438_s24 + $0x2c4] ss:$16 sps:$4 sm:$0xff]   ;;  %2076 = vmatprep.subr.bf16.mxu0 %v5243_v9  ;;  %v5248_v12 = vld [vmem:[%s6438_s24 + $0x2c0] ss:$16 sps:$4 sm:$0xff]  }
  0x82   : > { %2117 = vmatprep.subr.bf16.mxu1 %v5245_v10  ;;  %v5249_v13 = vld [vmem:[%s6438_s24 + $0xa4] ss:$16 sps:$4 sm:$0xff]   ;;  %v5253_v15 = vld [vmem:[%s6438_s24 + $0xa0] ss:$16 sps:$4 sm:$0xff]  }
  0x83   : > { %v5251_v14 = vld [vmem:[%s6438_s24 + $0x2a4] ss:$16 sps:$4 sm:$0xff]   ;;  %v5254_v16 = vld [vmem:[%s6438_s24 + $0x2a0] ss:$16 sps:$4 sm:$0xff]  }
  0x84   : > { %2077 = vmatpush1.bf16.msra.mxu0 %v5247_v11  ;;  %v5255_v17 = vld [vmem:[%s6438_s24 + $0x84] ss:$16 sps:$4 sm:$0xff]   ;;  %v5259_v19 = vld [vmem:[%s6438_s24 + $0x80] ss:$16 sps:$4 sm:$0xff]  }
  0x85   : > { %2118 = vmatpush1.bf16.msra.mxu1 %v5248_v12  ;;  %2078 = vmatprep.subr.bf16.mxu0 %v5249_v13  ;;  %v5257_v18 = vld [vmem:[%s6438_s24 + $0x284] ss:$16 sps:$4 sm:$0xff]   ;;  %v5260_v20 = vld [vmem:[%s6438_s24 + $0x280] ss:$16 sps:$4 sm:$0xff]  }
  0x86   : > { %2119 = vmatprep.subr.bf16.mxu1 %v5251_v14  ;;  %v5261_v21 = vld [vmem:[%s6438_s24 + $0x64] ss:$16 sps:$4 sm:$0xff]   ;;  %v5265_v23 = vld [vmem:[%s6438_s24 + $0x60] ss:$16 sps:$4 sm:$0xff]  }
  0x87   : > { %v5263_v22 = vld [vmem:[%s6438_s24 + $0x264] ss:$16 sps:$4 sm:$0xff]   ;;  %v5266_v24 = vld [vmem:[%s6438_s24 + $0x260] ss:$16 sps:$4 sm:$0xff]  }
  0x88   : > { %2079 = vmatpush1.bf16.msra.mxu0 %v5253_v15  ;;  %v5267_v25 = vld [vmem:[%s6438_s24 + $0x44] ss:$16 sps:$4 sm:$0xff]   ;;  %v5271_v27 = vld [vmem:[%s6438_s24 + $0x40] ss:$16 sps:$4 sm:$0xff]  }
  0x89   : > { %2120 = vmatpush1.bf16.msra.mxu1 %v5254_v16  ;;  %2080 = vmatprep.subr.bf16.mxu0 %v5255_v17  ;;  %v5269_v26 = vld [vmem:[%s6438_s24 + $0x244] ss:$16 sps:$4 sm:$0xff]   ;;  %v5272_v28 = vld [vmem:[%s6438_s24 + $0x240] ss:$16 sps:$4 sm:$0xff]  }
  0x8a   : > { %2121 = vmatprep.subr.bf16.mxu1 %v5257_v18  ;;  %v5273_v29 = vld [vmem:[%s6438_s24 + $0x24] ss:$16 sps:$4 sm:$0xff]   ;;  %v5277_v31 = vld [vmem:[%s6438_s24 + $0x20] ss:$16 sps:$4 sm:$0xff]  }
  0x8b   : > { %v5275_v30 = vld [vmem:[%s6438_s24 + $0x224] ss:$16 sps:$4 sm:$0xff]   ;;  %v5278_v32 = vld [vmem:[%s6438_s24 + $0x220] ss:$16 sps:$4 sm:$0xff]  }
  0x8c   : > { %2081 = vmatpush1.bf16.msra.mxu0 %v5259_v19  ;;  %v5279_v33 = vld [vmem:[%s6438_s24 + $0x4] ss:$16 sps:$4 sm:$0xff]   ;;  %v5283_v35 = vld [vmem:[%s6438_s24] ss:$16 sps:$4 sm:$0xff]  }
  0x8d   : > { %2122 = vmatpush1.bf16.msra.mxu1 %v5260_v20  ;;  %2082 = vmatprep.subr.bf16.mxu0 %v5261_v21  ;;  %v5281_v34 = vld [vmem:[%s6438_s24 + $0x204] ss:$16 sps:$4 sm:$0xff]   ;;  %v5284_v36 = vld [vmem:[%s6438_s24 + $0x200] ss:$16 sps:$4 sm:$0xff]  }
  0x8e   : > { %2123 = vmatprep.subr.bf16.mxu1 %v5263_v22  ;;  %v5285_v37 = vld [vmem:[%s6438_s24 + $0x1e4] ss:$16 sps:$4 sm:$0xff]   ;;  %v5289_v39 = vld [vmem:[%s6438_s24 + $0x1e0] ss:$16 sps:$4 sm:$0xff]  }
  0x8f   : > { %v5287_v38 = vld [vmem:[%s6438_s24 + $0x3e4] ss:$16 sps:$4 sm:$0xff]   ;;  %v5290_v40 = vld [vmem:[%s6438_s24 + $0x3e0] ss:$16 sps:$4 sm:$0xff]  }
  0x90   : > { %2083 = vmatpush1.bf16.msra.mxu0 %v5265_v23  ;;  %v5291_v41 = vld [vmem:[%s6438_s24 + $0x1c4] ss:$16 sps:$4 sm:$0xff]   ;;  %v5295_v43 = vld [vmem:[%s6438_s24 + $0x1c0] ss:$16 sps:$4 sm:$0xff]  }
  0x91   : > { %2124 = vmatpush1.bf16.msra.mxu1 %v5266_v24  ;;  %2084 = vmatprep.subr.bf16.mxu0 %v5267_v25  ;;  %v5293_v42 = vld [vmem:[%s6438_s24 + $0x3c4] ss:$16 sps:$4 sm:$0xff]   ;;  %v5296_v44 = vld [vmem:[%s6438_s24 + $0x3c0] ss:$16 sps:$4 sm:$0xff]  }
  0x92   : > { %2125 = vmatprep.subr.bf16.mxu1 %v5269_v26  ;;  %v5297_v45 = vld [vmem:[%s6438_s24 + $0x1a4] ss:$16 sps:$4 sm:$0xff]   ;;  %v5301_v47 = vld [vmem:[%s6438_s24 + $0x1a0] ss:$16 sps:$4 sm:$0xff]  }
  0x93   : > { %v5299_v46 = vld [vmem:[%s6438_s24 + $0x3a4] ss:$16 sps:$4 sm:$0xff]   ;;  %v5302_v48 = vld [vmem:[%s6438_s24 + $0x3a0] ss:$16 sps:$4 sm:$0xff]  }
  0x94   : > { %2085 = vmatpush1.bf16.msra.mxu0 %v5271_v27  ;;  %v5303_v49 = vld [vmem:[%s6438_s24 + $0x184] ss:$16 sps:$4 sm:$0xff]   ;;  %v5307_v54 = vld [vmem:[%s6438_s24 + $0x180] ss:$16 sps:$4 sm:$0xff]  }
  0x95   : > { %2126 = vmatpush1.bf16.msra.mxu1 %v5272_v28  ;;  %2086 = vmatprep.subr.bf16.mxu0 %v5273_v29  ;;  %v5305_v50 = vld [vmem:[%s6438_s24 + $0x384] ss:$16 sps:$4 sm:$0xff]   ;;  %v5308_v55 = vld [vmem:[%s6438_s24 + $0x380] ss:$16 sps:$4 sm:$0xff]  }
  0x96   : > { %2127 = vmatprep.subr.bf16.mxu1 %v5275_v30  ;;  %v506_v51 = vld [vmem:[%s6460_s10] sm:$0xff]  ;;  %v507_v53 = vld [vmem:[%s6460_s10 + $0x8] sm:$0xff] }
  0x97   : > { %v6522_v52 = vcombine.high %v506_v51, %v506_v51  ;;  %v6527_v56 = vcombine.high %v507_v53, %v507_v53  ;;  %v5309_v57 = vld [vmem:[%s6438_s24 + $0x164] ss:$16 sps:$4 sm:$0xff]   ;;  %v5313_v59 = vld [vmem:[%s6438_s24 + $0x160] ss:$16 sps:$4 sm:$0xff]   ;;  %v6549_v11 = vcombine.low %v506_v51, %v506_v51  ;;  %v6551_v12 = vcombine.low %v507_v53, %v507_v53 }
  0x98   : > { %2087 = vmatpush1.bf16.msra.mxu0 %v5277_v31  ;;  %v5311_v58 = vld [vmem:[%s6438_s24 + $0x364] ss:$16 sps:$4 sm:$0xff]   ;;  %v5314_v60 = vld [vmem:[%s6438_s24 + $0x360] ss:$16 sps:$4 sm:$0xff]  }
  0x99   : > { %2128 = vmatpush1.bf16.msra.mxu1 %v5278_v32  ;;  %2088 = vmatprep.subr.bf16.mxu0 %v5279_v33  ;;  %v5315_v61 = vld [vmem:[%s6438_s24 + $0x144] ss:$16 sps:$4 sm:$0xff]   ;;  %v5319_v63 = vld [vmem:[%s6438_s24 + $0x140] ss:$16 sps:$4 sm:$0xff]  }
  0x9a   : > { %2129 = vmatprep.subr.bf16.mxu1 %v5281_v34  ;;  %2106 = vmatprep.mubr.bf16.mxu0 %v6522_v52  ;;  %v5317_v62 = vld [vmem:[%s6438_s24 + $0x344] ss:$16 sps:$4 sm:$0xff]   ;;  %v5320_v0 = vld [vmem:[%s6438_s24 + $0x340] ss:$16 sps:$4 sm:$0xff]  }
  0x9b   : > { %2147 = vmatprep.mubr.bf16.mxu1 %v6527_v56  ;;  %v5321_v1 = vld [vmem:[%s6438_s24 + $0x124] ss:$16 sps:$4 sm:$0xff]   ;;  %v5325_v3 = vld [vmem:[%s6438_s24 + $0x120] ss:$16 sps:$4 sm:$0xff]  }
  0x9c   : > { %2089 = vmatpush1.bf16.msra.mxu0 %v5283_v35  ;;  %v5323_v2 = vld [vmem:[%s6438_s24 + $0x324] ss:$16 sps:$4 sm:$0xff]   ;;  %v5326_v4 = vld [vmem:[%s6438_s24 + $0x320] ss:$16 sps:$4 sm:$0xff]  }
  0x9d   : > { %2130 = vmatpush1.bf16.msra.mxu1 %v5284_v36  ;;  %2090 = vmatprep.subr.bf16.mxu0 %v5285_v37  ;;  %v5327_v5 = vld [vmem:[%s6438_s24 + $0x104] ss:$16 sps:$4 sm:$0xff]   ;;  %v5331_v7 = vld [vmem:[%s6438_s24 + $0x100] ss:$16 sps:$4 sm:$0xff]  }
  0x9e   : > { %2131 = vmatprep.subr.bf16.mxu1 %v5287_v38  ;;  %v5329_v6 = vld [vmem:[%s6438_s24 + $0x304] ss:$16 sps:$4 sm:$0xff]   ;;  %v5332_v8 = vld [vmem:[%s6438_s24 + $0x300] ss:$16 sps:$4 sm:$0xff]  }
  0x9f   : > { %v5339_v9 = vld [vmem:[%s6438_s24 + $0x4e4] ss:$16 sps:$4 sm:$0xff]   ;;  %v5337_v13 = vld [vmem:[%s6438_s24 + $0x4e0] ss:$16 sps:$4 sm:$0xff]  }
  0xa0   : > { %2091 = vmatpush2.bf16.msra.mxu0 %v5289_v39  ;;  %v5342_v10 = vld [vmem:[%s6438_s24 + $0x6e4] ss:$16 sps:$4 sm:$0xff]   ;;  %v5340_v14 = vld [vmem:[%s6438_s24 + $0x6e0] ss:$16 sps:$4 sm:$0xff]  }
  0xa1   : > { %2132 = vmatpush2.bf16.msra.mxu1 %v5290_v40  ;;  %2092 = vmatprep.subr.bf16.mxu0 %v5291_v41  ;;  %v5345_v15 = vld [vmem:[%s6438_s24 + $0x4c4] ss:$16 sps:$4 sm:$0xff]   ;;  %v5343_v17 = vld [vmem:[%s6438_s24 + $0x4c0] ss:$16 sps:$4 sm:$0xff]  }
  0xa2   : > { %2133 = vmatprep.subr.bf16.mxu1 %v5293_v42  ;;  %v5348_v16 = vld [vmem:[%s6438_s24 + $0x6c4] ss:$16 sps:$4 sm:$0xff]   ;;  %v5346_v18 = vld [vmem:[%s6438_s24 + $0x6c0] ss:$16 sps:$4 sm:$0xff]  }
  0xa3   : > { %v5351_v19 = vld [vmem:[%s6438_s24 + $0x4a4] ss:$16 sps:$4 sm:$0xff]   ;;  %v5349_v21 = vld [vmem:[%s6438_s24 + $0x4a0] ss:$16 sps:$4 sm:$0xff]  }
  0xa4   : > { %2093 = vmatpush2.bf16.msra.mxu0 %v5295_v43  ;;  %v5354_v20 = vld [vmem:[%s6438_s24 + $0x6a4] ss:$16 sps:$4 sm:$0xff]   ;;  %v5352_v22 = vld [vmem:[%s6438_s24 + $0x6a0] ss:$16 sps:$4 sm:$0xff]  }
  0xa5   : > { %2134 = vmatpush2.bf16.msra.mxu1 %v5296_v44  ;;  %2094 = vmatprep.subr.bf16.mxu0 %v5297_v45  ;;  %v5357_v23 = vld [vmem:[%s6438_s24 + $0x484] ss:$16 sps:$4 sm:$0xff]   ;;  %v5355_v25 = vld [vmem:[%s6438_s24 + $0x480] ss:$16 sps:$4 sm:$0xff]  }
  0xa6   : > { %2135 = vmatprep.subr.bf16.mxu1 %v5299_v46  ;;  %v5360_v24 = vld [vmem:[%s6438_s24 + $0x684] ss:$16 sps:$4 sm:$0xff]   ;;  %v5358_v26 = vld [vmem:[%s6438_s24 + $0x680] ss:$16 sps:$4 sm:$0xff]  }
  0xa7   : > { %v5363_v27 = vld [vmem:[%s6438_s24 + $0x464] ss:$16 sps:$4 sm:$0xff]   ;;  %v5361_v29 = vld [vmem:[%s6438_s24 + $0x460] ss:$16 sps:$4 sm:$0xff]  }
  0xa8   : > { %2095 = vmatpush2.bf16.msra.mxu0 %v5301_v47  ;;  %v5366_v28 = vld [vmem:[%s6438_s24 + $0x664] ss:$16 sps:$4 sm:$0xff]   ;;  %v5364_v30 = vld [vmem:[%s6438_s24 + $0x660] ss:$16 sps:$4 sm:$0xff]  }
  0xa9   : > { %2136 = vmatpush2.bf16.msra.mxu1 %v5302_v48  ;;  %2096 = vmatprep.subr.bf16.mxu0 %v5303_v49  ;;  %v5369_v31 = vld [vmem:[%s6438_s24 + $0x444] ss:$16 sps:$4 sm:$0xff]   ;;  %v5367_v33 = vld [vmem:[%s6438_s24 + $0x440] ss:$16 sps:$4 sm:$0xff]  }
  0xaa   : > { %2137 = vmatprep.subr.bf16.mxu1 %v5305_v50  ;;  %v5372_v32 = vld [vmem:[%s6438_s24 + $0x644] ss:$16 sps:$4 sm:$0xff]   ;;  %v5370_v34 = vld [vmem:[%s6438_s24 + $0x640] ss:$16 sps:$4 sm:$0xff]  }
  0xab   : > { %v5375_v35 = vld [vmem:[%s6438_s24 + $0x424] ss:$16 sps:$4 sm:$0xff]   ;;  %v5373_v39 = vld [vmem:[%s6438_s24 + $0x420] ss:$16 sps:$4 sm:$0xff]  }
  0xac   : > { %2097 = vmatpush2.bf16.msra.mxu0 %v5307_v54  ;;  %v5378_v36 = vld [vmem:[%s6438_s24 + $0x624] ss:$16 sps:$4 sm:$0xff]   ;;  %v5376_v40 = vld [vmem:[%s6438_s24 + $0x620] ss:$16 sps:$4 sm:$0xff]  }
  0xad   : > { %2138 = vmatpush2.bf16.msra.mxu1 %v5308_v55  ;;  %2098 = vmatprep.subr.bf16.mxu0 %v5309_v57  ;;  %v6580_v37 = vld [vmem:[%s6460_s10 + $0x10] sm:$0xff]  ;;  %v6583_v38 = vld [vmem:[%s6460_s10 + $0x18] sm:$0xff] }
  0xae   : > { %2139 = vmatprep.subr.bf16.mxu1 %v5311_v58  ;;  %v6589_v41 = vcombine.high %v6580_v37, %v6580_v37  ;;  %v6593_v42 = vcombine.high %v6583_v38, %v6583_v38  ;;  %v5381_v43 = vld [vmem:[%s6438_s24 + $0x404] ss:$16 sps:$4 sm:$0xff]   ;;  %v5379_v45 = vld [vmem:[%s6438_s24 + $0x400] ss:$16 sps:$4 sm:$0xff]  }
  0xaf   : > { %v5384_v44 = vld [vmem:[%s6438_s24 + $0x604] ss:$16 sps:$4 sm:$0xff]   ;;  %v5382_v46 = vld [vmem:[%s6438_s24 + $0x600] ss:$16 sps:$4 sm:$0xff]  }
  0xb0   : > { %2099 = vmatpush2.bf16.msra.mxu0 %v5313_v59  ;;  %v5387_v47 = vld [vmem:[%s6438_s24 + $0x5e4] ss:$16 sps:$4 sm:$0xff]   ;;  %v5385_v49 = vld [vmem:[%s6438_s24 + $0x5e0] ss:$16 sps:$4 sm:$0xff]  }
  0xb1   : > { %2140 = vmatpush2.bf16.msra.mxu1 %v5314_v60  ;;  %2100 = vmatprep.subr.bf16.mxu0 %v5315_v61  ;;  %v5390_v48 = vld [vmem:[%s6438_s24 + $0x7e4] ss:$16 sps:$4 sm:$0xff]   ;;  %v5388_v50 = vld [vmem:[%s6438_s24 + $0x7e0] ss:$16 sps:$4 sm:$0xff]  }
  0xb2   : > { %2141 = vmatprep.subr.bf16.mxu1 %v5317_v62  ;;  %v5393_v51 = vld [vmem:[%s6438_s24 + $0x5c4] ss:$16 sps:$4 sm:$0xff]   ;;  %v5391_v54 = vld [vmem:[%s6438_s24 + $0x5c0] ss:$16 sps:$4 sm:$0xff]  }
  0xb3   : > { %v5396_v53 = vld [vmem:[%s6438_s24 + $0x7c4] ss:$16 sps:$4 sm:$0xff]   ;;  %v5394_v55 = vld [vmem:[%s6438_s24 + $0x7c0] ss:$16 sps:$4 sm:$0xff]  }
  0xb4   : > { %2101 = vmatpush2.bf16.msra.mxu0 %v5319_v63  ;;  %v5399_v57 = vld [vmem:[%s6438_s24 + $0x5a4] ss:$16 sps:$4 sm:$0xff]   ;;  %v5397_v59 = vld [vmem:[%s6438_s24 + $0x5a0] ss:$16 sps:$4 sm:$0xff]  }
  0xb5   : > { %2142 = vmatpush2.bf16.msra.mxu1 %v5320_v0  ;;  %2102 = vmatprep.subr.bf16.mxu0 %v5321_v1  ;;  %v5402_v58 = vld [vmem:[%s6438_s24 + $0x7a4] ss:$16 sps:$4 sm:$0xff]   ;;  %v5400_v60 = vld [vmem:[%s6438_s24 + $0x7a0] ss:$16 sps:$4 sm:$0xff]  }
  0xb6   : > { %2143 = vmatprep.subr.bf16.mxu1 %v5323_v2  ;;  %v5405_v61 = vld [vmem:[%s6438_s24 + $0x584] ss:$16 sps:$4 sm:$0xff]   ;;  %v5403_v63 = vld [vmem:[%s6438_s24 + $0x580] ss:$16 sps:$4 sm:$0xff]  }
  0xb7   : > { %v5408_v62 = vld [vmem:[%s6438_s24 + $0x784] ss:$16 sps:$4 sm:$0xff]   ;;  %v5406_v0 = vld [vmem:[%s6438_s24 + $0x780] ss:$16 sps:$4 sm:$0xff]  }
  0xb8   : > { %2103 = vmatpush2.bf16.msra.mxu0 %v5325_v3  ;;  %v5411_v1 = vld [vmem:[%s6438_s24 + $0x564] ss:$16 sps:$4 sm:$0xff]   ;;  %v5409_v3 = vld [vmem:[%s6438_s24 + $0x560] ss:$16 sps:$4 sm:$0xff]  }
  0xb9   : > { %2144 = vmatpush2.bf16.msra.mxu1 %v5326_v4  ;;  %2104 = vmatprep.subr.bf16.mxu0 %v5327_v5  ;;  %v5414_v2 = vld [vmem:[%s6438_s24 + $0x764] ss:$16 sps:$4 sm:$0xff]   ;;  %v5412_v4 = vld [vmem:[%s6438_s24 + $0x760] ss:$16 sps:$4 sm:$0xff]  }
  0xba   : > { %2145 = vmatprep.subr.bf16.mxu1 %v5329_v6  ;;  %v5417_v5 = vld [vmem:[%s6438_s24 + $0x544] ss:$16 sps:$4 sm:$0xff]  }
  0xbb   : > { %v5420_v6 = vld [vmem:[%s6438_s24 + $0x744] ss:$16 sps:$4 sm:$0xff]  }
  0xbc   : > { %2105 = vmatpush2.bf16.msra.mxu0 %v5331_v7  ;;  %v5415_v7 = vld [vmem:[%s6438_s24 + $0x540] ss:$16 sps:$4 sm:$0xff]  }
  0xbd   : > { %2146 = vmatpush2.bf16.msra.mxu1 %v5332_v8  ;;  %2156 = vmatprep.subr.bf16.mxu0 %v5339_v9  ;;  %v5418_v8 = vld [vmem:[%s6438_s24 + $0x740] ss:$16 sps:$4 sm:$0xff]   ;;  %v5423_v9 = vld [vmem:[%s6438_s24 + $0x524] ss:$16 sps:$4 sm:$0xff]  }
  0xbe   : > { %2197 = vmatprep.subr.bf16.mxu1 %v5342_v10  ;;  %v5426_v10 = vld [vmem:[%s6438_s24 + $0x724] ss:$16 sps:$4 sm:$0xff]  }
  0xbf   : > { %2107 = vmatmul.mubr.bf16.vlgmr.msra.gmra.mxu0 %v6549_v11 }
  0xc0   : > { %2148 = vmatmul.mubr.bf16.vlgmr.msra.gmra.mxu1 %v6551_v12  ;;  %2157 = vmatpush1.bf16.msra.mxu0 %v5337_v13  ;;  %v5421_v13 = vld [vmem:[%s6438_s24 + $0x520] ss:$16 sps:$4 sm:$0xff]  }
  0xc1   : > { %2198 = vmatpush1.bf16.msra.mxu1 %v5340_v14  ;;  %2158 = vmatprep.subr.bf16.mxu0 %v5345_v15  ;;  %v5424_v14 = vld [vmem:[%s6438_s24 + $0x720] ss:$16 sps:$4 sm:$0xff]   ;;  %v5429_v15 = vld [vmem:[%s6438_s24 + $0x504] ss:$16 sps:$4 sm:$0xff]  }
  0xc2   : > { %2199 = vmatprep.subr.bf16.mxu1 %v5348_v16  ;;  %2188 = vmatprep.mubr.bf16.mxu0 %v6589_v41  ;;  %v5432_v16 = vld [vmem:[%s6438_s24 + $0x704] ss:$16 sps:$4 sm:$0xff]  }
  0xc3   : > { %2229 = vmatprep.mubr.bf16.mxu1 %v6593_v42 }
  0xc4   : > { %2159 = vmatpush1.bf16.msra.mxu0 %v5343_v17  ;;  %v5427_v17 = vld [vmem:[%s6438_s24 + $0x500] ss:$16 sps:$4 sm:$0xff]  }
  0xc5   : > { %2200 = vmatpush1.bf16.msra.mxu1 %v5346_v18  ;;  %2160 = vmatprep.subr.bf16.mxu0 %v5351_v19  ;;  %v5430_v18 = vld [vmem:[%s6438_s24 + $0x700] ss:$16 sps:$4 sm:$0xff]   ;;  %v5439_v19 = vld [vmem:[%s6438_s24 + $0xec] ss:$16 sps:$4 sm:$0xff]  }
  0xc6   : > { %2201 = vmatprep.subr.bf16.mxu1 %v5354_v20  ;;  %v5442_v20 = vld [vmem:[%s6438_s24 + $0x2ec] ss:$16 sps:$4 sm:$0xff]  }
  0xc8   : > { %2161 = vmatpush1.bf16.msra.mxu0 %v5349_v21  ;;  %v6637_v21 = vcombine.low %v6580_v37, %v6580_v37  ;;  %v5461_v37 = vld [vmem:[%s6438_s24 + $0x68] ss:$16 sps:$4 sm:$0xff]  }
  0xc9   : > { %2202 = vmatpush1.bf16.msra.mxu1 %v5352_v22  ;;  %2162 = vmatprep.subr.bf16.mxu0 %v5357_v23  ;;  %v6641_v22 = vcombine.low %v6583_v38, %v6583_v38  ;;  %v5437_v23 = vld [vmem:[%s6438_s24 + $0xe8] ss:$16 sps:$4 sm:$0xff]  }
  0xca   : > { %2203 = vmatprep.subr.bf16.mxu1 %v5360_v24  ;;  %v5440_v24 = vld [vmem:[%s6438_s24 + $0x2e8] ss:$16 sps:$4 sm:$0xff]  }
  0xcb   : > { %v5464_v38 = vld [vmem:[%s6438_s24 + $0x268] ss:$16 sps:$4 sm:$0xff]  }
  0xcc   : > { %2163 = vmatpush1.bf16.msra.mxu0 %v5355_v25  ;;  %v5445_v25 = vld [vmem:[%s6438_s24 + $0xcc] ss:$16 sps:$4 sm:$0xff]  }
  0xcd   : > { %2204 = vmatpush1.bf16.msra.mxu1 %v5358_v26  ;;  %2164 = vmatprep.subr.bf16.mxu0 %v5363_v27  ;;  %v5448_v26 = vld [vmem:[%s6438_s24 + $0x2cc] ss:$16 sps:$4 sm:$0xff]   ;;  %v5443_v27 = vld [vmem:[%s6438_s24 + $0xc8] ss:$16 sps:$4 sm:$0xff]  }
  0xce   : > { %2205 = vmatprep.subr.bf16.mxu1 %v5366_v28  ;;  %v5446_v28 = vld [vmem:[%s6438_s24 + $0x2c8] ss:$16 sps:$4 sm:$0xff]  }
  0xd0   : > { %2165 = vmatpush1.bf16.msra.mxu0 %v5361_v29  ;;  %v5451_v29 = vld [vmem:[%s6438_s24 + $0xac] ss:$16 sps:$4 sm:$0xff]  }
  0xd1   : > { %2206 = vmatpush1.bf16.msra.mxu1 %v5364_v30  ;;  %2166 = vmatprep.subr.bf16.mxu0 %v5369_v31  ;;  %v5454_v30 = vld [vmem:[%s6438_s24 + $0x2ac] ss:$16 sps:$4 sm:$0xff]   ;;  %v5449_v31 = vld [vmem:[%s6438_s24 + $0xa8] ss:$16 sps:$4 sm:$0xff]  }
  0xd2   : > { %2207 = vmatprep.subr.bf16.mxu1 %v5372_v32  ;;  %v5452_v32 = vld [vmem:[%s6438_s24 + $0x2a8] ss:$16 sps:$4 sm:$0xff]  }
  0xd4   : > { %2167 = vmatpush1.bf16.msra.mxu0 %v5367_v33  ;;  %v5457_v33 = vld [vmem:[%s6438_s24 + $0x8c] ss:$16 sps:$4 sm:$0xff]  }
  0xd5   : > { %2208 = vmatpush1.bf16.msra.mxu1 %v5370_v34  ;;  %2168 = vmatprep.subr.bf16.mxu0 %v5375_v35  ;;  %v5460_v34 = vld [vmem:[%s6438_s24 + $0x28c] ss:$16 sps:$4 sm:$0xff]   ;;  %v5455_v35 = vld [vmem:[%s6438_s24 + $0x88] ss:$16 sps:$4 sm:$0xff]  }
  0xd6   : > { %2209 = vmatprep.subr.bf16.mxu1 %v5378_v36  ;;  %v5458_v36 = vld [vmem:[%s6438_s24 + $0x288] ss:$16 sps:$4 sm:$0xff]  }
  0xd8   : > { %2169 = vmatpush1.bf16.msra.mxu0 %v5373_v39  ;;  %v5469_v39 = vld [vmem:[%s6438_s24 + $0x4c] ss:$16 sps:$4 sm:$0xff]  }
  0xd9   : > { %2210 = vmatpush1.bf16.msra.mxu1 %v5376_v40  ;;  %2170 = vmatprep.subr.bf16.mxu0 %v5381_v43  ;;  %v5472_v40 = vld [vmem:[%s6438_s24 + $0x24c] ss:$16 sps:$4 sm:$0xff]   ;;  %v5467_v43 = vld [vmem:[%s6438_s24 + $0x48] ss:$16 sps:$4 sm:$0xff]  }
  0xda   : > { %2211 = vmatprep.subr.bf16.mxu1 %v5384_v44  ;;  %v5470_v44 = vld [vmem:[%s6438_s24 + $0x248] ss:$16 sps:$4 sm:$0xff]  }
  0xdc   : > { %2171 = vmatpush1.bf16.msra.mxu0 %v5379_v45  ;;  %v5475_v45 = vld [vmem:[%s6438_s24 + $0x2c] ss:$16 sps:$4 sm:$0xff]  }
  0xdd   : > { %2212 = vmatpush1.bf16.msra.mxu1 %v5382_v46  ;;  %2172 = vmatprep.subr.bf16.mxu0 %v5387_v47  ;;  %v5478_v46 = vld [vmem:[%s6438_s24 + $0x22c] ss:$16 sps:$4 sm:$0xff]   ;;  %v5473_v47 = vld [vmem:[%s6438_s24 + $0x28] ss:$16 sps:$4 sm:$0xff]  }
  0xde   : > { %2213 = vmatprep.subr.bf16.mxu1 %v5390_v48  ;;  %v5476_v48 = vld [vmem:[%s6438_s24 + $0x228] ss:$16 sps:$4 sm:$0xff]  }
  0xe0   : > { %2173 = vmatpush2.bf16.msra.mxu0 %v5385_v49  ;;  %v5481_v49 = vld [vmem:[%s6438_s24 + $0xc] ss:$16 sps:$4 sm:$0xff]  }
  0xe1   : > { %2214 = vmatpush2.bf16.msra.mxu1 %v5388_v50  ;;  %2174 = vmatprep.subr.bf16.mxu0 %v5393_v51  ;;  %v5484_v50 = vld [vmem:[%s6438_s24 + $0x20c] ss:$16 sps:$4 sm:$0xff]   ;;  %v5479_v51 = vld [vmem:[%s6438_s24 + $0x8] ss:$16 sps:$4 sm:$0xff]  }
  0xe2   : > { %2215 = vmatprep.subr.bf16.mxu1 %v5396_v53  ;;  %v5482_v53 = vld [vmem:[%s6438_s24 + $0x208] ss:$16 sps:$4 sm:$0xff]  }
  0xe4   : > { %2175 = vmatpush2.bf16.msra.mxu0 %v5391_v54  ;;  %v5487_v54 = vld [vmem:[%s6438_s24 + $0x1ec] ss:$16 sps:$4 sm:$0xff]  }
  0xe5   : > { %2216 = vmatpush2.bf16.msra.mxu1 %v5394_v55  ;;  %2176 = vmatprep.subr.bf16.mxu0 %v5399_v57  ;;  %v5490_v55 = vld [vmem:[%s6438_s24 + $0x3ec] ss:$16 sps:$4 sm:$0xff]   ;;  %v5485_v57 = vld [vmem:[%s6438_s24 + $0x1e8] ss:$16 sps:$4 sm:$0xff]  }
  0xe6   : > { %2217 = vmatprep.subr.bf16.mxu1 %v5402_v58  ;;  %v5488_v58 = vld [vmem:[%s6438_s24 + $0x3e8] ss:$16 sps:$4 sm:$0xff]  }
  0xe8   : > { %2177 = vmatpush2.bf16.msra.mxu0 %v5397_v59  ;;  %v5493_v59 = vld [vmem:[%s6438_s24 + $0x1cc] ss:$16 sps:$4 sm:$0xff]  }
  0xe9   : > { %2218 = vmatpush2.bf16.msra.mxu1 %v5400_v60  ;;  %2178 = vmatprep.subr.bf16.mxu0 %v5405_v61  ;;  %v5496_v60 = vld [vmem:[%s6438_s24 + $0x3cc] ss:$16 sps:$4 sm:$0xff]   ;;  %v5491_v61 = vld [vmem:[%s6438_s24 + $0x1c8] ss:$16 sps:$4 sm:$0xff]  }
  0xea   : > { %2219 = vmatprep.subr.bf16.mxu1 %v5408_v62  ;;  %v5494_v62 = vld [vmem:[%s6438_s24 + $0x3c8] ss:$16 sps:$4 sm:$0xff]  }
  0xec   : > { %2179 = vmatpush2.bf16.msra.mxu0 %v5403_v63  ;;  %v5499_v63 = vld [vmem:[%s6438_s24 + $0x1ac] ss:$16 sps:$4 sm:$0xff]  }
  0xed   : > { %2220 = vmatpush2.bf16.msra.mxu1 %v5406_v0  ;;  %2180 = vmatprep.subr.bf16.mxu0 %v5411_v1  ;;  %v5502_v0 = vld [vmem:[%s6438_s24 + $0x3ac] ss:$16 sps:$4 sm:$0xff]   ;;  %v5497_v1 = vld [vmem:[%s6438_s24 + $0x1a8] ss:$16 sps:$4 sm:$0xff]  }
  0xee   : > { %2221 = vmatprep.subr.bf16.mxu1 %v5414_v2  ;;  %v5500_v2 = vld [vmem:[%s6438_s24 + $0x3a8] ss:$16 sps:$4 sm:$0xff]  }
  0xf0   : > { %2181 = vmatpush2.bf16.msra.mxu0 %v5409_v3  ;;  %v5505_v3 = vld [vmem:[%s6438_s24 + $0x18c] ss:$16 sps:$4 sm:$0xff]  }
  0xf1   : > { %2222 = vmatpush2.bf16.msra.mxu1 %v5412_v4  ;;  %2182 = vmatprep.subr.bf16.mxu0 %v5417_v5  ;;  %v5508_v4 = vld [vmem:[%s6438_s24 + $0x38c] ss:$16 sps:$4 sm:$0xff]   ;;  %v5503_v5 = vld [vmem:[%s6438_s24 + $0x188] ss:$16 sps:$4 sm:$0xff]  }
  0xf2   : > { %2223 = vmatprep.subr.bf16.mxu1 %v5420_v6  ;;  %v5506_v6 = vld [vmem:[%s6438_s24 + $0x388] ss:$16 sps:$4 sm:$0xff]  }
  0xf4   : > { %2183 = vmatpush2.bf16.msra.mxu0 %v5415_v7  ;;  %v5511_v7 = vld [vmem:[%s6438_s24 + $0x16c] ss:$16 sps:$4 sm:$0xff]  }
  0xf5   : > { %2224 = vmatpush2.bf16.msra.mxu1 %v5418_v8  ;;  %2184 = vmatprep.subr.bf16.mxu0 %v5423_v9  ;;  %v5514_v8 = vld [vmem:[%s6438_s24 + $0x36c] ss:$16 sps:$4 sm:$0xff]   ;;  %v5509_v9 = vld [vmem:[%s6438_s24 + $0x168] ss:$16 sps:$4 sm:$0xff]  }
  0xf6   : > { %2225 = vmatprep.subr.bf16.mxu1 %v5426_v10  ;;  %v5512_v10 = vld [vmem:[%s6438_s24 + $0x368] ss:$16 sps:$4 sm:$0xff]  }
  0xf8   : > { %2185 = vmatpush2.bf16.msra.mxu0 %v5421_v13  ;;  %v5517_v13 = vld [vmem:[%s6438_s24 + $0x14c] ss:$16 sps:$4 sm:$0xff]  }
  0xf9   : > { %2226 = vmatpush2.bf16.msra.mxu1 %v5424_v14  ;;  %2186 = vmatprep.subr.bf16.mxu0 %v5429_v15  ;;  %v5520_v14 = vld [vmem:[%s6438_s24 + $0x34c] ss:$16 sps:$4 sm:$0xff]   ;;  %v5515_v15 = vld [vmem:[%s6438_s24 + $0x148] ss:$16 sps:$4 sm:$0xff]  }
  0xfa   : > { %2227 = vmatprep.subr.bf16.mxu1 %v5432_v16  ;;  %v5518_v16 = vld [vmem:[%s6438_s24 + $0x348] ss:$16 sps:$4 sm:$0xff]  }
  0xfc   : > { %2187 = vmatpush2.bf16.msra.mxu0 %v5427_v17  ;;  %v5523_v17 = vld [vmem:[%s6438_s24 + $0x12c] ss:$16 sps:$4 sm:$0xff]  }
  0xfd   : > { %2228 = vmatpush2.bf16.msra.mxu1 %v5430_v18  ;;  %2238 = vmatprep.subr.bf16.mxu0 %v5439_v19  ;;  %v5526_v18 = vld [vmem:[%s6438_s24 + $0x32c] ss:$16 sps:$4 sm:$0xff]   ;;  %v5521_v19 = vld [vmem:[%s6438_s24 + $0x128] ss:$16 sps:$4 sm:$0xff]  }
  0xfe   : > { %2279 = vmatprep.subr.bf16.mxu1 %v5442_v20  ;;  %v5524_v20 = vld [vmem:[%s6438_s24 + $0x328] ss:$16 sps:$4 sm:$0xff]  }
  0xff   : > { %2189 = vmatmul.mubr.bf16.vlgmr.msra.gmra.mxu0 %v6637_v21 }
 0x100   : > { %2230 = vmatmul.mubr.bf16.vlgmr.msra.gmra.mxu1 %v6641_v22  ;;  %2239 = vmatpush1.bf16.msra.mxu0 %v5437_v23  ;;  %v5529_v23 = vld [vmem:[%s6438_s24 + $0x10c] ss:$16 sps:$4 sm:$0xff]  }
 0x101   : > { %2280 = vmatpush1.bf16.msra.mxu1 %v5440_v24  ;;  %2240 = vmatprep.subr.bf16.mxu0 %v5445_v25  ;;  %v5532_v24 = vld [vmem:[%s6438_s24 + $0x30c] ss:$16 sps:$4 sm:$0xff]   ;;  %v5527_v25 = vld [vmem:[%s6438_s24 + $0x108] ss:$16 sps:$4 sm:$0xff]  }
 0x102   : > { %2281 = vmatprep.subr.bf16.mxu1 %v5448_v26  ;;  %2270 = vmatprep.mubr.bf16.mxu0 %v6522_v52  ;;  %v5463_v52 = vld [vmem:[%s6438_s24 + $0x6c] ss:$16 sps:$4 sm:$0xff]   ;;  %v5530_v26 = vld [vmem:[%s6438_s24 + $0x308] ss:$16 sps:$4 sm:$0xff]  }
 0x103   : > { %2311 = vmatprep.mubr.bf16.mxu1 %v6527_v56  ;;  %v5466_v56 = vld [vmem:[%s6438_s24 + $0x26c] ss:$16 sps:$4 sm:$0xff]  }
 0x104   : > { %2241 = vmatpush1.bf16.msra.mxu0 %v5443_v27  ;;  %v5535_v27 = vld [vmem:[%s6438_s24 + $0x4ec] ss:$16 sps:$4 sm:$0xff]  }
 0x105   : > { %2282 = vmatpush1.bf16.msra.mxu1 %v5446_v28  ;;  %2242 = vmatprep.subr.bf16.mxu0 %v5451_v29  ;;  %v5538_v28 = vld [vmem:[%s6438_s24 + $0x6ec] ss:$16 sps:$4 sm:$0xff]   ;;  %v5533_v29 = vld [vmem:[%s6438_s24 + $0x4e8] ss:$16 sps:$4 sm:$0xff]  }
 0x106   : > { %2283 = vmatprep.subr.bf16.mxu1 %v5454_v30  ;;  %v5536_v30 = vld [vmem:[%s6438_s24 + $0x6e8] ss:$16 sps:$4 sm:$0xff]  }
 0x108   : > { %2243 = vmatpush1.bf16.msra.mxu0 %v5449_v31  ;;  %v5541_v31 = vld [vmem:[%s6438_s24 + $0x4cc] ss:$16 sps:$4 sm:$0xff]  }
 0x109   : > { %2284 = vmatpush1.bf16.msra.mxu1 %v5452_v32  ;;  %2244 = vmatprep.subr.bf16.mxu0 %v5457_v33  ;;  %v5544_v32 = vld [vmem:[%s6438_s24 + $0x6cc] ss:$16 sps:$4 sm:$0xff]   ;;  %v5539_v33 = vld [vmem:[%s6438_s24 + $0x4c8] ss:$16 sps:$4 sm:$0xff]  }
 0x10a   : > { %2285 = vmatprep.subr.bf16.mxu1 %v5460_v34  ;;  %v5542_v34 = vld [vmem:[%s6438_s24 + $0x6c8] ss:$16 sps:$4 sm:$0xff]  }
 0x10c   : > { %2245 = vmatpush1.bf16.msra.mxu0 %v5455_v35  ;;  %v5547_v35 = vld [vmem:[%s6438_s24 + $0x4ac] ss:$16 sps:$4 sm:$0xff]  }
 0x10d   : > { %2286 = vmatpush1.bf16.msra.mxu1 %v5458_v36  ;;  %2246 = vmatprep.subr.bf16.mxu0 %v5463_v52  ;;  %v5550_v36 = vld [vmem:[%s6438_s24 + $0x6ac] ss:$16 sps:$4 sm:$0xff]  }
 0x10e   : > { %2287 = vmatprep.subr.bf16.mxu1 %v5466_v56  ;;  %v5553_v52 = vld [vmem:[%s6438_s24 + $0x48c] ss:$16 sps:$4 sm:$0xff]  }
 0x10f   : > { %v5556_v56 = vld [vmem:[%s6438_s24 + $0x68c] ss:$16 sps:$4 sm:$0xff]  }
 0x110   : > { %2247 = vmatpush1.bf16.msra.mxu0 %v5461_v37  ;;  %v5551_v37 = vld [vmem:[%s6438_s24 + $0x488] ss:$16 sps:$4 sm:$0xff]  }
 0x111   : > { %2288 = vmatpush1.bf16.msra.mxu1 %v5464_v38  ;;  %2248 = vmatprep.subr.bf16.mxu0 %v5469_v39  ;;  %v5562_v38 = vld [vmem:[%s6438_s24 + $0x66c] ss:$16 sps:$4 sm:$0xff]   ;;  %v5557_v39 = vld [vmem:[%s6438_s24 + $0x468] ss:$16 sps:$4 sm:$0xff]  }
 0x112   : > { %2289 = vmatprep.subr.bf16.mxu1 %v5472_v40  ;;  %v5560_v40 = vld [vmem:[%s6438_s24 + $0x668] ss:$16 sps:$4 sm:$0xff]  }
 0x114   : > { %2249 = vmatpush1.bf16.msra.mxu0 %v5467_v43  ;;  %v5565_v43 = vld [vmem:[%s6438_s24 + $0x44c] ss:$16 sps:$4 sm:$0xff]  }
 0x115   : > { %2290 = vmatpush1.bf16.msra.mxu1 %v5470_v44  ;;  %2250 = vmatprep.subr.bf16.mxu0 %v5475_v45  ;;  %v5568_v44 = vld [vmem:[%s6438_s24 + $0x64c] ss:$16 sps:$4 sm:$0xff]   ;;  %v5563_v45 = vld [vmem:[%s6438_s24 + $0x448] ss:$16 sps:$4 sm:$0xff]  }
 0x116   : > { %2291 = vmatprep.subr.bf16.mxu1 %v5478_v46  ;;  %v5566_v46 = vld [vmem:[%s6438_s24 + $0x648] ss:$16 sps:$4 sm:$0xff]  }
 0x118   : > { %2251 = vmatpush1.bf16.msra.mxu0 %v5473_v47  ;;  %v5571_v47 = vld [vmem:[%s6438_s24 + $0x42c] ss:$16 sps:$4 sm:$0xff]  }
 0x119   : > { %2292 = vmatpush1.bf16.msra.mxu1 %v5476_v48  ;;  %2252 = vmatprep.subr.bf16.mxu0 %v5481_v49  ;;  %v5574_v48 = vld [vmem:[%s6438_s24 + $0x62c] ss:$16 sps:$4 sm:$0xff]   ;;  %v5569_v49 = vld [vmem:[%s6438_s24 + $0x428] ss:$16 sps:$4 sm:$0xff]  }
 0x11a   : > { %2293 = vmatprep.subr.bf16.mxu1 %v5484_v50  ;;  %v5572_v50 = vld [vmem:[%s6438_s24 + $0x628] ss:$16 sps:$4 sm:$0xff]  }
 0x11c   : > { %2253 = vmatpush1.bf16.msra.mxu0 %v5479_v51  ;;  %v5577_v51 = vld [vmem:[%s6438_s24 + $0x40c] ss:$16 sps:$4 sm:$0xff]  }
 0x11d   : > { %2294 = vmatpush1.bf16.msra.mxu1 %v5482_v53  ;;  %2254 = vmatprep.subr.bf16.mxu0 %v5487_v54  ;;  %v5580_v53 = vld [vmem:[%s6438_s24 + $0x60c] ss:$16 sps:$4 sm:$0xff]   ;;  %v5575_v54 = vld [vmem:[%s6438_s24 + $0x408] ss:$16 sps:$4 sm:$0xff]  }
 0x11e   : > { %2295 = vmatprep.subr.bf16.mxu1 %v5490_v55  ;;  %v5578_v55 = vld [vmem:[%s6438_s24 + $0x608] ss:$16 sps:$4 sm:$0xff]  }
 0x120   : > { %2255 = vmatpush2.bf16.msra.mxu0 %v5485_v57  ;;  %v5583_v57 = vld [vmem:[%s6438_s24 + $0x5ec] ss:$16 sps:$4 sm:$0xff]  }
 0x121   : > { %2296 = vmatpush2.bf16.msra.mxu1 %v5488_v58  ;;  %2256 = vmatprep.subr.bf16.mxu0 %v5493_v59  ;;  %v5586_v58 = vld [vmem:[%s6438_s24 + $0x7ec] ss:$16 sps:$4 sm:$0xff]   ;;  %v5581_v59 = vld [vmem:[%s6438_s24 + $0x5e8] ss:$16 sps:$4 sm:$0xff]  }
 0x122   : > { %2297 = vmatprep.subr.bf16.mxu1 %v5496_v60  ;;  %v5584_v60 = vld [vmem:[%s6438_s24 + $0x7e8] ss:$16 sps:$4 sm:$0xff]  }
 0x124   : > { %2257 = vmatpush2.bf16.msra.mxu0 %v5491_v61  ;;  %v5589_v61 = vld [vmem:[%s6438_s24 + $0x5cc] ss:$16 sps:$4 sm:$0xff]  }
 0x125   : > { %2298 = vmatpush2.bf16.msra.mxu1 %v5494_v62  ;;  %2258 = vmatprep.subr.bf16.mxu0 %v5499_v63  ;;  %v5592_v62 = vld [vmem:[%s6438_s24 + $0x7cc] ss:$16 sps:$4 sm:$0xff]   ;;  %v5587_v63 = vld [vmem:[%s6438_s24 + $0x5c8] ss:$16 sps:$4 sm:$0xff]  }
 0x126   : > { %2299 = vmatprep.subr.bf16.mxu1 %v5502_v0  ;;  %v5590_v0 = vld [vmem:[%s6438_s24 + $0x7c8] ss:$16 sps:$4 sm:$0xff]  }
 0x128   : > { %2259 = vmatpush2.bf16.msra.mxu0 %v5497_v1  ;;  %v5595_v1 = vld [vmem:[%s6438_s24 + $0x5ac] ss:$16 sps:$4 sm:$0xff]  }
 0x129   : > { %2300 = vmatpush2.bf16.msra.mxu1 %v5500_v2  ;;  %2260 = vmatprep.subr.bf16.mxu0 %v5505_v3  ;;  %v5598_v2 = vld [vmem:[%s6438_s24 + $0x7ac] ss:$16 sps:$4 sm:$0xff]   ;;  %v5593_v3 = vld [vmem:[%s6438_s24 + $0x5a8] ss:$16 sps:$4 sm:$0xff]  }
 0x12a   : > { %2301 = vmatprep.subr.bf16.mxu1 %v5508_v4  ;;  %v5596_v4 = vld [vmem:[%s6438_s24 + $0x7a8] ss:$16 sps:$4 sm:$0xff]  }
 0x12c   : > { %2261 = vmatpush2.bf16.msra.mxu0 %v5503_v5  ;;  %v5601_v5 = vld [vmem:[%s6438_s24 + $0x58c] ss:$16 sps:$4 sm:$0xff]  }
 0x12d   : > { %2302 = vmatpush2.bf16.msra.mxu1 %v5506_v6  ;;  %2262 = vmatprep.subr.bf16.mxu0 %v5511_v7  ;;  %v5604_v6 = vld [vmem:[%s6438_s24 + $0x78c] ss:$16 sps:$4 sm:$0xff]   ;;  %v5599_v7 = vld [vmem:[%s6438_s24 + $0x588] ss:$16 sps:$4 sm:$0xff]  }
 0x12e   : > { %2303 = vmatprep.subr.bf16.mxu1 %v5514_v8  ;;  %v5602_v8 = vld [vmem:[%s6438_s24 + $0x788] ss:$16 sps:$4 sm:$0xff]  }
 0x130   : > { %2263 = vmatpush2.bf16.msra.mxu0 %v5509_v9  ;;  %v5607_v9 = vld [vmem:[%s6438_s24 + $0x56c] ss:$16 sps:$4 sm:$0xff]  }
 0x131   : > { %2304 = vmatpush2.bf16.msra.mxu1 %v5512_v10  ;;  %2264 = vmatprep.subr.bf16.mxu0 %v5517_v13  ;;  %v5610_v10 = vld [vmem:[%s6438_s24 + $0x76c] ss:$16 sps:$4 sm:$0xff]   ;;  %v5605_v13 = vld [vmem:[%s6438_s24 + $0x568] ss:$16 sps:$4 sm:$0xff]  }
 0x132   : > { %2305 = vmatprep.subr.bf16.mxu1 %v5520_v14  ;;  %v5608_v14 = vld [vmem:[%s6438_s24 + $0x768] ss:$16 sps:$4 sm:$0xff]  }
 0x134   : > { %2265 = vmatpush2.bf16.msra.mxu0 %v5515_v15  ;;  %v5613_v15 = vld [vmem:[%s6438_s24 + $0x54c] ss:$16 sps:$4 sm:$0xff]  }
 0x135   : > { %2306 = vmatpush2.bf16.msra.mxu1 %v5518_v16  ;;  %2266 = vmatprep.subr.bf16.mxu0 %v5523_v17  ;;  %v5616_v16 = vld [vmem:[%s6438_s24 + $0x74c] ss:$16 sps:$4 sm:$0xff]   ;;  %v5611_v17 = vld [vmem:[%s6438_s24 + $0x548] ss:$16 sps:$4 sm:$0xff]  }
 0x136   : > { %2307 = vmatprep.subr.bf16.mxu1 %v5526_v18  ;;  %v5614_v18 = vld [vmem:[%s6438_s24 + $0x748] ss:$16 sps:$4 sm:$0xff]  }
 0x138   : > { %2267 = vmatpush2.bf16.msra.mxu0 %v5521_v19  ;;  %v5619_v19 = vld [vmem:[%s6438_s24 + $0x52c] ss:$16 sps:$4 sm:$0xff]  }
 0x139   : > { %2308 = vmatpush2.bf16.msra.mxu1 %v5524_v20  ;;  %2268 = vmatprep.subr.bf16.mxu0 %v5529_v23  ;;  %v5622_v20 = vld [vmem:[%s6438_s24 + $0x72c] ss:$16 sps:$4 sm:$0xff]   ;;  %v5617_v23 = vld [vmem:[%s6438_s24 + $0x528] ss:$16 sps:$4 sm:$0xff]  }
 0x13a   : > { %2309 = vmatprep.subr.bf16.mxu1 %v5532_v24  ;;  %v5620_v24 = vld [vmem:[%s6438_s24 + $0x728] ss:$16 sps:$4 sm:$0xff]  }
 0x13c   : > { %2269 = vmatpush2.bf16.msra.mxu0 %v5527_v25  ;;  %v5625_v25 = vld [vmem:[%s6438_s24 + $0x50c] ss:$16 sps:$4 sm:$0xff]  }
 0x13d   : > { %2310 = vmatpush2.bf16.msra.mxu1 %v5530_v26  ;;  %2320 = vmatprep.subr.bf16.mxu0 %v5535_v27  ;;  %v5628_v26 = vld [vmem:[%s6438_s24 + $0x70c] ss:$16 sps:$4 sm:$0xff]   ;;  %v5623_v27 = vld [vmem:[%s6438_s24 + $0x508] ss:$16 sps:$4 sm:$0xff]  }
 0x13e   : > { %2361 = vmatprep.subr.bf16.mxu1 %v5538_v28  ;;  %v5626_v28 = vld [vmem:[%s6438_s24 + $0x708] ss:$16 sps:$4 sm:$0xff]  }
 0x13f   : > { %2271 = vmatmul.mubr.bf16.vlgmr.msra.gmra.mxu0 %v6549_v11  ;;  %v5545_v11 = vld [vmem:[%s6438_s24 + $0x4a8] ss:$16 sps:$4 sm:$0xff]  }
 0x140   : > { %2312 = vmatmul.mubr.bf16.vlgmr.msra.gmra.mxu1 %v6551_v12  ;;  %2321 = vmatpush1.bf16.msra.mxu0 %v5533_v29  ;;  %v5548_v12 = vld [vmem:[%s6438_s24 + $0x6a8] ss:$16 sps:$4 sm:$0xff]  }
 0x141   : > { %2362 = vmatpush1.bf16.msra.mxu1 %v5536_v30  ;;  %2322 = vmatprep.subr.bf16.mxu0 %v5541_v31 }
 0x142   : > { %2363 = vmatprep.subr.bf16.mxu1 %v5544_v32  ;;  %2352 = vmatprep.mubr.bf16.mxu0 %v6589_v41  ;;  %v5554_v41 = vld [vmem:[%s6438_s24 + $0x688] ss:$16 sps:$4 sm:$0xff]  }
 0x143   : > { %2393 = vmatprep.mubr.bf16.mxu1 %v6593_v42  ;;  %v5559_v42 = vld [vmem:[%s6438_s24 + $0x46c] ss:$16 sps:$4 sm:$0xff]  }
 0x144   : > { %2323 = vmatpush1.bf16.msra.mxu0 %v5539_v33 }
 0x145   : > { %2364 = vmatpush1.bf16.msra.mxu1 %v5542_v34  ;;  %2324 = vmatprep.subr.bf16.mxu0 %v5547_v35 }
 0x146   : > { %2365 = vmatprep.subr.bf16.mxu1 %v5550_v36 }
 0x148   : > { %2325 = vmatpush1.bf16.msra.mxu0 %v5545_v11 }
 0x149   : > { %2366 = vmatpush1.bf16.msra.mxu1 %v5548_v12  ;;  %2326 = vmatprep.subr.bf16.mxu0 %v5553_v52 }
 0x14a   : > { %2367 = vmatprep.subr.bf16.mxu1 %v5556_v56 }
 0x14c   : > { %2327 = vmatpush1.bf16.msra.mxu0 %v5551_v37 }
 0x14d   : > { %2368 = vmatpush1.bf16.msra.mxu1 %v5554_v41  ;;  %2328 = vmatprep.subr.bf16.mxu0 %v5559_v42  ;;  %v502_v41 = vld [vmem:[#allocation2 + $0x10] sm:$0xff] }
 0x14e   : > { %2369 = vmatprep.subr.bf16.mxu1 %v5562_v38 }
 0x150   : > { %2329 = vmatpush1.bf16.msra.mxu0 %v5557_v39 }
 0x151   : > { %2370 = vmatpush1.bf16.msra.mxu1 %v5560_v40  ;;  %2330 = vmatprep.subr.bf16.mxu0 %v5565_v43  ;;  %v503_v43 = vld [vmem:[#allocation2] sm:$0xff] }
 0x152   : > { %2371 = vmatprep.subr.bf16.mxu1 %v5568_v44 }
 0x154   : > { %2331 = vmatpush1.bf16.msra.mxu0 %v5563_v45 }
 0x155   : > { %2372 = vmatpush1.bf16.msra.mxu1 %v5566_v46  ;;  %2332 = vmatprep.subr.bf16.mxu0 %v5571_v47 }
 0x156   : > { %2373 = vmatprep.subr.bf16.mxu1 %v5574_v48 }
 0x158   : > { %2333 = vmatpush1.bf16.msra.mxu0 %v5569_v49 }
 0x159   : > { %2374 = vmatpush1.bf16.msra.mxu1 %v5572_v50  ;;  %2334 = vmatprep.subr.bf16.mxu0 %v5577_v51 }
 0x15a   : > { %2375 = vmatprep.subr.bf16.mxu1 %v5580_v53 }
 0x15c   : > { %2335 = vmatpush1.bf16.msra.mxu0 %v5575_v54 }
 0x15d   : > { %2376 = vmatpush1.bf16.msra.mxu1 %v5578_v55  ;;  %2336 = vmatprep.subr.bf16.mxu0 %v5583_v57 }
 0x15e   : > { %2377 = vmatprep.subr.bf16.mxu1 %v5586_v58 }
 0x160   : > { %2337 = vmatpush2.bf16.msra.mxu0 %v5581_v59 }
 0x161   : > { %2378 = vmatpush2.bf16.msra.mxu1 %v5584_v60  ;;  %2338 = vmatprep.subr.bf16.mxu0 %v5589_v61 }
 0x162   : > { %2379 = vmatprep.subr.bf16.mxu1 %v5592_v62 }
 0x164   : > { %2339 = vmatpush2.bf16.msra.mxu0 %v5587_v63 }
 0x165   : > { %2380 = vmatpush2.bf16.msra.mxu1 %v5590_v0  ;;  %2340 = vmatprep.subr.bf16.mxu0 %v5595_v1  ;;  %v504_v0 = vld [vmem:[#allocation2 + $0x18] sm:$0xff] }
 0x166   : > { %2381 = vmatprep.subr.bf16.mxu1 %v5598_v2 }
 0x168   : > { %2341 = vmatpush2.bf16.msra.mxu0 %v5593_v3 }
 0x169   : > { %2382 = vmatpush2.bf16.msra.mxu1 %v5596_v4  ;;  %2342 = vmatprep.subr.bf16.mxu0 %v5601_v5  ;;  %v505_v5 = vld [vmem:[#allocation2 + $0x8] sm:$0xff] }
 0x16a   : > { %2383 = vmatprep.subr.bf16.mxu1 %v5604_v6 }
 0x16c   : > { %2343 = vmatpush2.bf16.msra.mxu0 %v5599_v7 }
 0x16d   : > { %2384 = vmatpush2.bf16.msra.mxu1 %v5602_v8  ;;  %2344 = vmatprep.subr.bf16.mxu0 %v5607_v9 }
 0x16e   : > { %2385 = vmatprep.subr.bf16.mxu1 %v5610_v10 }
 0x170   : > { %2345 = vmatpush2.bf16.msra.mxu0 %v5605_v13 }
 0x171   : > { %2386 = vmatpush2.bf16.msra.mxu1 %v5608_v14  ;;  %2346 = vmatprep.subr.bf16.mxu0 %v5613_v15 }
 0x172   : > { %2387 = vmatprep.subr.bf16.mxu1 %v5616_v16 }
 0x174   : > { %2347 = vmatpush2.bf16.msra.mxu0 %v5611_v17 }
 0x175   : > { %2388 = vmatpush2.bf16.msra.mxu1 %v5614_v18  ;;  %2348 = vmatprep.subr.bf16.mxu0 %v5619_v19 }
 0x176   : > { %2389 = vmatprep.subr.bf16.mxu1 %v5622_v20 }
 0x178   : > { %2349 = vmatpush2.bf16.msra.mxu0 %v5617_v23 }
 0x179   : > { %2390 = vmatpush2.bf16.msra.mxu1 %v5620_v24  ;;  %2350 = vmatprep.subr.bf16.mxu0 %v5625_v25 }
 0x17a   : > { %2391 = vmatprep.subr.bf16.mxu1 %v5628_v26 }
 0x17c   : > { %2351 = vmatpush2.bf16.msra.mxu0 %v5623_v27 }
 0x17d   : > { %2392 = vmatpush2.bf16.msra.mxu1 %v5626_v28 }
 0x17f   : > { %v2108_v29 = vpop.f32.mrf.mxu0  ;;  %2353 = vmatmul.mubr.bf16.vlgmr.msra.gmra.mxu0 %v6637_v21 }
 0x180   : > { %v2149_v30 = vpop.f32.mrf.mxu1  ;;  %2394 = vmatmul.mubr.bf16.vlgmr.msra.gmra.mxu1 %v6641_v22 }
 0x181   : > { %v2110_v31 = vpop.f32.mrf.mxu0  ;;  %v2150_v11 = vadd.f32 %v2149_v30, %v2108_v29 }
 0x182   : > { %v2151_v32 = vpop.f32.mrf.mxu1 }
 0x183   : > { %v2112_v33 = vpop.f32.mrf.mxu0  ;;  %v2152_v56 = vadd.f32 %v2151_v32, %v2110_v31 }
 0x184   : > { %v2153_v34 = vpop.f32.mrf.mxu1 }
 0x185   : > { %v2113_v35 = vpop.f32.mrf.mxu0 }
 0x186   : > { %v2154_v36 = vpop.f32.mrf.mxu1 }
 0x1bf   : > { %v2190_v12 = vpop.f32.mrf.mxu0 }
 0x1c0   : > { %v2231_v52 = vpop.f32.mrf.mxu1  ;;  %v2191_v37 = vadd.f32 %v2190_v12, %v2150_v11 }
 0x1c1   : > { %v2192_v42 = vpop.f32.mrf.mxu0 }
 0x1c2   : > { %v2233_v38 = vpop.f32.mrf.mxu1  ;;  %v2232_v39 = vadd.f32 %v2231_v52, %v2191_v37  ;;  %v2193_v40 = vadd.f32 %v2192_v42, %v2152_v56 }
 0x1c3   : > { %v2194_v21 = vpop.f32.mrf.mxu0 }
 0x1c4   : > { %v2235_v44 = vpop.f32.mrf.mxu1  ;;  %v2402_v22 = vadd.f32 %v2232_v39, %v502_v41  ;;  %v2234_v45 = vadd.f32 %v2233_v38, %v2193_v40 }
 0x1c5   : > { %v2195_v46 = vpop.f32.mrf.mxu0 }
 0x1c6   : > { %v2236_v47 = vpop.f32.mrf.mxu1  ;;  %2406 = vst [vmem:[#allocation2 + $0x10] sm:$0xff] %v2402_v22  ;;  %v2403_v48 = vadd.f32 %v2234_v45, %v503_v43 }
 0x1c8   : > { %2407 = vst [vmem:[#allocation2] sm:$0xff] %v2403_v48 }
 0x1ff   : > { %v2272_v49 = vpop.f32.mrf.mxu0 }
 0x200   : > { %v2313_v50 = vpop.f32.mrf.mxu1 }
 0x201   : > { %v2274_v51 = vpop.f32.mrf.mxu0  ;;  %v2314_v59 = vadd.f32 %v2313_v50, %v2272_v49 }
 0x202   : > { %v2315_v53 = vpop.f32.mrf.mxu1 }
 0x203   : > { %v2276_v54 = vpop.f32.mrf.mxu0  ;;  %v2316_v62 = vadd.f32 %v2315_v53, %v2274_v51 }
 0x204   : > { %v2317_v55 = vpop.f32.mrf.mxu1 }
 0x205   : > { %v2277_v57 = vpop.f32.mrf.mxu0 }
 0x206   : > { %v2318_v58 = vpop.f32.mrf.mxu1 }
 0x23f   : > { %v2354_v60 = vpop.f32.mrf.mxu0 }
 0x240   : > { %v2395_v61 = vpop.f32.mrf.mxu1  ;;  %v2355_v63 = vadd.f32 %v2354_v60, %v2314_v59 }
 0x241   : > { %v2356_v1 = vpop.f32.mrf.mxu0 }
 0x242   : > { %v2397_v2 = vpop.f32.mrf.mxu1  ;;  %v2396_v3 = vadd.f32 %v2395_v61, %v2355_v63  ;;  %v2357_v4 = vadd.f32 %v2356_v1, %v2316_v62 }
 0x243   : > { %v2358_v6 = vpop.f32.mrf.mxu0 }
 0x244   : > { %v2399_v7 = vpop.f32.mrf.mxu1  ;;  %v2404_v8 = vadd.f32 %v2396_v3, %v504_v0  ;;  %v2398_v9 = vadd.f32 %v2397_v2, %v2357_v4  ;;  %2413 = sbr.rel (%p4866_p2) target bundleno = 1328 (0x530), region = 88 }
 0x245   : > { %v2359_v10 = vpop.f32.mrf.mxu0 }
 0x246   : > { %v2400_v13 = vpop.f32.mrf.mxu1  ;;  %2408 = vst [vmem:[#allocation2 + $0x18] sm:$0xff] %v2404_v8  ;;  %v2405_v14 = vadd.f32 %v2398_v9, %v505_v5 }
 0x248   : > { %2409 = vst [vmem:[#allocation2 + $0x8] sm:$0xff] %v2405_v14 }
 0x249   : > { %v5629_v15 = vld [vmem:[#allocation6 + $0xe4] ss:$16 sps:$4 sm:$0xff]   ;;  %v5633_v17 = vld [vmem:[#allocation6 + $0xe0] ss:$16 sps:$4 sm:$0xff]   ;;  %vm4426_vm12 = vcmask 7168  }
 0x24a   : > { %v5631_v16 = vld [vmem:[#allocation6 + $0x2e4] ss:$16 sps:$4 sm:$0xff]   ;;  %3224 = vmatprep.subr.bf16.mxu0 %v5629_v15  ;;  %v5634_v18 = vld [vmem:[#allocation6 + $0x2e0] ss:$16 sps:$4 sm:$0xff]  }
 0x24b   : > { %3265 = vmatprep.subr.bf16.mxu1 %v5631_v16  ;;  %v5635_v19 = vld [vmem:[#allocation6 + $0xc4] ss:$16 sps:$4 sm:$0xff]   ;;  %3225 = vmatpush1.bf16.msra.mxu0 %v5633_v17  ;;  %v5639_v23 = vld [vmem:[#allocation6 + $0xc0] ss:$16 sps:$4 sm:$0xff]  }
 0x24c   : > { %3266 = vmatpush1.bf16.msra.mxu1 %v5634_v18  ;;  %v5637_v20 = vld [vmem:[#allocation6 + $0x2c4] ss:$16 sps:$4 sm:$0xff]   ;;  %3226 = vmatprep.subr.bf16.mxu0 %v5635_v19  ;;  %v5640_v24 = vld [vmem:[#allocation6 + $0x2c0] ss:$16 sps:$4 sm:$0xff]  }
 0x24d   : > { %3267 = vmatprep.subr.bf16.mxu1 %v5637_v20  ;;  %v5641_v25 = vld [vmem:[#allocation6 + $0xa4] ss:$16 sps:$4 sm:$0xff]   ;;  %v5645_v27 = vld [vmem:[#allocation6 + $0xa0] ss:$16 sps:$4 sm:$0xff]  }
 0x24e   : > { %v5643_v26 = vld [vmem:[#allocation6 + $0x2a4] ss:$16 sps:$4 sm:$0xff]   ;;  %v5646_v28 = vld [vmem:[#allocation6 + $0x2a0] ss:$16 sps:$4 sm:$0xff]  }
 0x24f   : > { %3227 = vmatpush1.bf16.msra.mxu0 %v5639_v23  ;;  %v5647_v29 = vld [vmem:[#allocation6 + $0x84] ss:$16 sps:$4 sm:$0xff]   ;;  %v5651_v31 = vld [vmem:[#allocation6 + $0x80] ss:$16 sps:$4 sm:$0xff]  }
 0x250   : > { %3268 = vmatpush1.bf16.msra.mxu1 %v5640_v24  ;;  %3228 = vmatprep.subr.bf16.mxu0 %v5641_v25  ;;  %v5649_v30 = vld [vmem:[#allocation6 + $0x284] ss:$16 sps:$4 sm:$0xff]   ;;  %v5652_v32 = vld [vmem:[#allocation6 + $0x280] ss:$16 sps:$4 sm:$0xff]  }
 0x251   : > { %3269 = vmatprep.subr.bf16.mxu1 %v5643_v26  ;;  %v5653_v33 = vld [vmem:[#allocation6 + $0x64] ss:$16 sps:$4 sm:$0xff]   ;;  %v5657_v35 = vld [vmem:[#allocation6 + $0x60] ss:$16 sps:$4 sm:$0xff]  }
 0x252   : > { %v5655_v34 = vld [vmem:[#allocation6 + $0x264] ss:$16 sps:$4 sm:$0xff]   ;;  %v5658_v36 = vld [vmem:[#allocation6 + $0x260] ss:$16 sps:$4 sm:$0xff]  }
 0x253   : > { %3229 = vmatpush1.bf16.msra.mxu0 %v5645_v27  ;;  %v5659_v11 = vld [vmem:[#allocation6 + $0x44] ss:$16 sps:$4 sm:$0xff]   ;;  %v5663_v52 = vld [vmem:[#allocation6 + $0x40] ss:$16 sps:$4 sm:$0xff]  }
 0x254   : > { %3270 = vmatpush1.bf16.msra.mxu1 %v5646_v28  ;;  %3230 = vmatprep.subr.bf16.mxu0 %v5647_v29  ;;  %v5661_v12 = vld [vmem:[#allocation6 + $0x244] ss:$16 sps:$4 sm:$0xff]   ;;  %v5664_v56 = vld [vmem:[#allocation6 + $0x240] ss:$16 sps:$4 sm:$0xff]  }
 0x255   : > { %3271 = vmatprep.subr.bf16.mxu1 %v5649_v30  ;;  %v5665_v37 = vld [vmem:[#allocation6 + $0x24] ss:$16 sps:$4 sm:$0xff]   ;;  %v5669_v42 = vld [vmem:[#allocation6 + $0x20] ss:$16 sps:$4 sm:$0xff]  }
 0x256   : > { %v5667_v41 = vld [vmem:[#allocation6 + $0x224] ss:$16 sps:$4 sm:$0xff]   ;;  %v5670_v38 = vld [vmem:[#allocation6 + $0x220] ss:$16 sps:$4 sm:$0xff]  }
 0x257   : > { %3231 = vmatpush1.bf16.msra.mxu0 %v5651_v31  ;;  %v5671_v39 = vld [vmem:[#allocation6 + $0x4] ss:$16 sps:$4 sm:$0xff]   ;;  %v5675_v43 = vld [vmem:[#allocation6] ss:$16 sps:$4 sm:$0xff]   ;;  %v5727_v31 = vld [vmem:[#allocation6 + $0xec] ss:$16 sps:$4 sm:$0xff]  }
 0x258   : > { %3272 = vmatpush1.bf16.msra.mxu1 %v5652_v32  ;;  %3232 = vmatprep.subr.bf16.mxu0 %v5653_v33  ;;  %v5673_v40 = vld [vmem:[#allocation6 + $0x204] ss:$16 sps:$4 sm:$0xff]   ;;  %v5676_v21 = vld [vmem:[#allocation6 + $0x200] ss:$16 sps:$4 sm:$0xff]   ;;  %v5730_v32 = vld [vmem:[#allocation6 + $0x2ec] ss:$16 sps:$4 sm:$0xff]  }
 0x259   : > { %3273 = vmatprep.subr.bf16.mxu1 %v5655_v34  ;;  %v5677_v44 = vld [vmem:[#allocation6 + $0x1e4] ss:$16 sps:$4 sm:$0xff]   ;;  %v5681_v45 = vld [vmem:[#allocation6 + $0x1e0] ss:$16 sps:$4 sm:$0xff]  }
 0x25a   : > { %v5679_v22 = vld [vmem:[#allocation6 + $0x3e4] ss:$16 sps:$4 sm:$0xff]   ;;  %v5682_v46 = vld [vmem:[#allocation6 + $0x3e0] ss:$16 sps:$4 sm:$0xff]  }
 0x25b   : > { %3233 = vmatpush1.bf16.msra.mxu0 %v5657_v35  ;;  %v5683_v47 = vld [vmem:[#allocation6 + $0x1c4] ss:$16 sps:$4 sm:$0xff]   ;;  %v5687_v49 = vld [vmem:[#allocation6 + $0x1c0] ss:$16 sps:$4 sm:$0xff]   ;;  %v5725_v35 = vld [vmem:[#allocation6 + $0xe8] ss:$16 sps:$4 sm:$0xff]  }
 0x25c   : > { %3274 = vmatpush1.bf16.msra.mxu1 %v5658_v36  ;;  %3234 = vmatprep.subr.bf16.mxu0 %v5659_v11  ;;  %v5685_v48 = vld [vmem:[#allocation6 + $0x3c4] ss:$16 sps:$4 sm:$0xff]   ;;  %v5688_v50 = vld [vmem:[#allocation6 + $0x3c0] ss:$16 sps:$4 sm:$0xff]   ;;  %v5728_v36 = vld [vmem:[#allocation6 + $0x2e8] ss:$16 sps:$4 sm:$0xff]  }
 0x25d   : > { %3275 = vmatprep.subr.bf16.mxu1 %v5661_v12  ;;  %v5689_v51 = vld [vmem:[#allocation6 + $0x1a4] ss:$16 sps:$4 sm:$0xff]   ;;  %v5693_v54 = vld [vmem:[#allocation6 + $0x1a0] ss:$16 sps:$4 sm:$0xff]   ;;  %v5733_v11 = vld [vmem:[#allocation6 + $0xcc] ss:$16 sps:$4 sm:$0xff]  }
 0x25e   : > { %v5691_v53 = vld [vmem:[#allocation6 + $0x3a4] ss:$16 sps:$4 sm:$0xff]   ;;  %v5694_v55 = vld [vmem:[#allocation6 + $0x3a0] ss:$16 sps:$4 sm:$0xff]   ;;  %v5736_v12 = vld [vmem:[#allocation6 + $0x2cc] ss:$16 sps:$4 sm:$0xff]  }
 0x25f   : > { %3235 = vmatpush1.bf16.msra.mxu0 %v5663_v52  ;;  %v5695_v57 = vld [vmem:[#allocation6 + $0x184] ss:$16 sps:$4 sm:$0xff]   ;;  %v5699_v59 = vld [vmem:[#allocation6 + $0x180] ss:$16 sps:$4 sm:$0xff]   ;;  %v5731_v52 = vld [vmem:[#allocation6 + $0xc8] ss:$16 sps:$4 sm:$0xff]  }
 0x260   : > { %3276 = vmatpush1.bf16.msra.mxu1 %v5664_v56  ;;  %3236 = vmatprep.subr.bf16.mxu0 %v5665_v37  ;;  %v5697_v58 = vld [vmem:[#allocation6 + $0x384] ss:$16 sps:$4 sm:$0xff]   ;;  %v5700_v60 = vld [vmem:[#allocation6 + $0x380] ss:$16 sps:$4 sm:$0xff]   ;;  %v5734_v56 = vld [vmem:[#allocation6 + $0x2c8] ss:$16 sps:$4 sm:$0xff]  }
 0x261   : > { %3277 = vmatprep.subr.bf16.mxu1 %v5667_v41  ;;  %v2415_v61 = vld [vmem:[#allocation2] sm:$0xff]  ;;  %v2417_v0 = vld [vmem:[#allocation2 + $0x8] sm:$0xff]  ;;  %v2414_v17 = vld [vmem:[#allocation2 + $0x10] sm:$0xff] }
 0x262   : > { %v5701_v62 = vld [vmem:[#allocation6 + $0x164] ss:$16 sps:$4 sm:$0xff]   ;;  %vm2419_vm0 = vcmp.gt.f32.partialorder %v2415_v61, 0.0  ;;  %v2423_v63 = vmul.f32 0.2, %v2415_v61  ;;  %vm2421_vm1 = vcmp.gt.f32.partialorder %v2417_v0, 0.0 }
 0x263   : > { %3237 = vmatpush1.bf16.msra.mxu0 %v5669_v42  ;;  %v5703_v1 = vld [vmem:[#allocation6 + $0x364] ss:$16 sps:$4 sm:$0xff]   ;;  %v2425_v2 = vmul.f32 0.2, %v2417_v0  ;;  %v5705_v6 = vld [vmem:[#allocation6 + $0x160] ss:$16 sps:$4 sm:$0xff]  }
 0x264   : > { %3278 = vmatpush1.bf16.msra.mxu1 %v5670_v38  ;;  %3238 = vmatprep.subr.bf16.mxu0 %v5671_v39  ;;  %v2427_v3 = vsel %vm2419_vm0, %v2415_v61, %v2423_v63  ;;  %v5706_v8 = vld [vmem:[#allocation6 + $0x360] ss:$16 sps:$4 sm:$0xff]   ;;  %v5707_v9 = vld [vmem:[#allocation6 + $0x144] ss:$16 sps:$4 sm:$0xff]   ;;  %v2422_v24 = vmul.f32 0.2, %v2414_v17 }
 0x265   : > { %3279 = vmatprep.subr.bf16.mxu1 %v5673_v40  ;;  %v6780_v4 = vpack.c.bf16 %v2427_v3, %v2427_v3  ;;  %v2429_v5 = vsel %vm2421_vm1, %v2417_v0, %v2425_v2  ;;  %v5709_v10 = vld [vmem:[#allocation6 + $0x344] ss:$16 sps:$4 sm:$0xff]   ;;  %v5711_v13 = vld [vmem:[#allocation6 + $0x140] ss:$16 sps:$4 sm:$0xff]   ;;  %vm2418_vm2 = vcmp.gt.f32.partialorder %v2414_v17, 0.0 }
 0x266   : > { %v2433_v7 = vpack.c.bf16 %v2429_v5, %v2429_v5  ;;  %v5712_v14 = vld [vmem:[#allocation6 + $0x340] ss:$16 sps:$4 sm:$0xff]   ;;  %v5713_v15 = vld [vmem:[#allocation6 + $0x124] ss:$16 sps:$4 sm:$0xff]   ;;  %v2426_v29 = vsel %vm2418_vm2, %v2414_v17, %v2422_v24  ;;  %v5739_v37 = vld [vmem:[#allocation6 + $0xac] ss:$16 sps:$4 sm:$0xff]  }
 0x267   : > { %3239 = vmatpush1.bf16.msra.mxu0 %v5675_v43  ;;  %3256 = vmatprep.mubr.bf16.mxu0 %v6780_v4  ;;  %v5715_v16 = vld [vmem:[#allocation6 + $0x324] ss:$16 sps:$4 sm:$0xff]   ;;  %v5717_v19 = vld [vmem:[#allocation6 + $0x120] ss:$16 sps:$4 sm:$0xff]   ;;  %v6783_v33 = vpack.c.bf16 %v2426_v29, %v2426_v29  ;;  %v5742_v41 = vld [vmem:[#allocation6 + $0x2ac] ss:$16 sps:$4 sm:$0xff]  }
 0x268   : > { %3280 = vmatpush1.bf16.msra.mxu1 %v5676_v21  ;;  %3240 = vmatprep.subr.bf16.mxu0 %v5677_v44  ;;  %v2416_v18 = vld [vmem:[#allocation2 + $0x18] sm:$0xff]  ;;  %v5718_v20 = vld [vmem:[#allocation6 + $0x320] ss:$16 sps:$4 sm:$0xff]  }
 0x269   : > { %3281 = vmatprep.subr.bf16.mxu1 %v5679_v22  ;;  %3297 = vmatprep.mubr.bf16.mxu1 %v2433_v7  ;;  %v5719_v23 = vld [vmem:[#allocation6 + $0x104] ss:$16 sps:$4 sm:$0xff]   ;;  %v2424_v25 = vmul.f32 0.2, %v2416_v18  ;;  %vm2420_vm3 = vcmp.gt.f32.partialorder %v2416_v18, 0.0 }
 0x26a   : > { %v5721_v26 = vld [vmem:[#allocation6 + $0x304] ss:$16 sps:$4 sm:$0xff]   ;;  %v5723_v27 = vld [vmem:[#allocation6 + $0x100] ss:$16 sps:$4 sm:$0xff]   ;;  %v5737_v42 = vld [vmem:[#allocation6 + $0xa8] ss:$16 sps:$4 sm:$0xff]  }
 0x26b   : > { %3241 = vmatpush2.bf16.msra.mxu0 %v5681_v45  ;;  %v5724_v28 = vld [vmem:[#allocation6 + $0x300] ss:$16 sps:$4 sm:$0xff]   ;;  %v2428_v30 = vsel %vm2420_vm3, %v2416_v18, %v2424_v25  ;;  %v5740_v38 = vld [vmem:[#allocation6 + $0x2a8] ss:$16 sps:$4 sm:$0xff]   ;;  %v5745_v39 = vld [vmem:[#allocation6 + $0x8c] ss:$16 sps:$4 sm:$0xff]  }
 0x26c   : > { %3282 = vmatpush2.bf16.msra.mxu1 %v5682_v46  ;;  %3242 = vmatprep.subr.bf16.mxu0 %v5683_v47  ;;  %v6785_v34 = vpack.c.bf16 %v2428_v30, %v2428_v30  ;;  %v5748_v40 = vld [vmem:[#allocation6 + $0x28c] ss:$16 sps:$4 sm:$0xff]   ;;  %v5743_v43 = vld [vmem:[#allocation6 + $0x88] ss:$16 sps:$4 sm:$0xff]  }
 0x26d   : > { %3283 = vmatprep.subr.bf16.mxu1 %v5685_v48  ;;  %v5746_v21 = vld [vmem:[#allocation6 + $0x288] ss:$16 sps:$4 sm:$0xff]   ;;  %v5751_v44 = vld [vmem:[#allocation6 + $0x6c] ss:$16 sps:$4 sm:$0xff]  }
 0x26e   : > { %v5754_v22 = vld [vmem:[#allocation6 + $0x26c] ss:$16 sps:$4 sm:$0xff]   ;;  %v5749_v45 = vld [vmem:[#allocation6 + $0x68] ss:$16 sps:$4 sm:$0xff]  }
 0x26f   : > { %3243 = vmatpush2.bf16.msra.mxu0 %v5687_v49  ;;  %v5752_v46 = vld [vmem:[#allocation6 + $0x268] ss:$16 sps:$4 sm:$0xff]   ;;  %v5757_v47 = vld [vmem:[#allocation6 + $0x4c] ss:$16 sps:$4 sm:$0xff]  }
 0x270   : > { %3284 = vmatpush2.bf16.msra.mxu1 %v5688_v50  ;;  %3244 = vmatprep.subr.bf16.mxu0 %v5689_v51  ;;  %v5760_v48 = vld [vmem:[#allocation6 + $0x24c] ss:$16 sps:$4 sm:$0xff]   ;;  %v5755_v49 = vld [vmem:[#allocation6 + $0x48] ss:$16 sps:$4 sm:$0xff]  }
 0x271   : > { %3285 = vmatprep.subr.bf16.mxu1 %v5691_v53  ;;  %v5758_v50 = vld [vmem:[#allocation6 + $0x248] ss:$16 sps:$4 sm:$0xff]   ;;  %v5763_v51 = vld [vmem:[#allocation6 + $0x2c] ss:$16 sps:$4 sm:$0xff]  }
 0x272   : > { %v5766_v53 = vld [vmem:[#allocation6 + $0x22c] ss:$16 sps:$4 sm:$0xff]   ;;  %v5773_v63 = vld [vmem:[#allocation6 + $0x1e8] ss:$16 sps:$4 sm:$0xff]  }
 0x273   : > { %3245 = vmatpush2.bf16.msra.mxu0 %v5693_v54  ;;  %v5761_v54 = vld [vmem:[#allocation6 + $0x28] ss:$16 sps:$4 sm:$0xff]   ;;  %v5775_v61 = vld [vmem:[#allocation6 + $0x1ec] ss:$16 sps:$4 sm:$0xff]  }
 0x274   : > { %3286 = vmatpush2.bf16.msra.mxu1 %v5694_v55  ;;  %3246 = vmatprep.subr.bf16.mxu0 %v5695_v57  ;;  %v5764_v55 = vld [vmem:[#allocation6 + $0x228] ss:$16 sps:$4 sm:$0xff]   ;;  %v5769_v57 = vld [vmem:[#allocation6 + $0xc] ss:$16 sps:$4 sm:$0xff]  }
 0x275   : > { %3287 = vmatprep.subr.bf16.mxu1 %v5697_v58  ;;  %v5772_v58 = vld [vmem:[#allocation6 + $0x20c] ss:$16 sps:$4 sm:$0xff]   ;;  %v5776_v0 = vld [vmem:[#allocation6 + $0x3e8] ss:$16 sps:$4 sm:$0xff]  }
 0x276   : > { %v5784_v2 = vld [vmem:[#allocation6 + $0x3cc] ss:$16 sps:$4 sm:$0xff]   ;;  %v5779_v3 = vld [vmem:[#allocation6 + $0x1c8] ss:$16 sps:$4 sm:$0xff]  }
 0x277   : > { %3247 = vmatpush2.bf16.msra.mxu0 %v5699_v59  ;;  %v5767_v59 = vld [vmem:[#allocation6 + $0x8] ss:$16 sps:$4 sm:$0xff]   ;;  %v5787_v5 = vld [vmem:[#allocation6 + $0x1ac] ss:$16 sps:$4 sm:$0xff]  }
 0x278   : > { %3288 = vmatpush2.bf16.msra.mxu1 %v5700_v60  ;;  %3248 = vmatprep.subr.bf16.mxu0 %v5701_v62  ;;  %v5770_v60 = vld [vmem:[#allocation6 + $0x208] ss:$16 sps:$4 sm:$0xff]   ;;  %v5778_v62 = vld [vmem:[#allocation6 + $0x3ec] ss:$16 sps:$4 sm:$0xff]  }
 0x279   : > { %3289 = vmatprep.subr.bf16.mxu1 %v5703_v1  ;;  %v5781_v1 = vld [vmem:[#allocation6 + $0x1cc] ss:$16 sps:$4 sm:$0xff]   ;;  %v5797_v17 = vld [vmem:[#allocation6 + $0x168] ss:$16 sps:$4 sm:$0xff]  }
 0x27a   : > { %v5800_v18 = vld [vmem:[#allocation6 + $0x368] ss:$16 sps:$4 sm:$0xff]   ;;  %v5811_v25 = vld [vmem:[#allocation6 + $0x12c] ss:$16 sps:$4 sm:$0xff]  }
 0x27b   : > { %3249 = vmatpush2.bf16.msra.mxu0 %v5705_v6  ;;  %v5790_v6 = vld [vmem:[#allocation6 + $0x3ac] ss:$16 sps:$4 sm:$0xff]   ;;  %v5806_v24 = vld [vmem:[#allocation6 + $0x348] ss:$16 sps:$4 sm:$0xff]  }
 0x27c   : > { %3290 = vmatpush2.bf16.msra.mxu1 %v5706_v8  ;;  %3250 = vmatprep.subr.bf16.mxu0 %v5707_v9  ;;  %v5788_v8 = vld [vmem:[#allocation6 + $0x3a8] ss:$16 sps:$4 sm:$0xff]   ;;  %v5793_v9 = vld [vmem:[#allocation6 + $0x18c] ss:$16 sps:$4 sm:$0xff]  }
 0x27d   : > { %3291 = vmatprep.subr.bf16.mxu1 %v5709_v10  ;;  %v5796_v10 = vld [vmem:[#allocation6 + $0x38c] ss:$16 sps:$4 sm:$0xff]  }
 0x27e   : > { %v5817_v29 = vld [vmem:[#allocation6 + $0x10c] ss:$16 sps:$4 sm:$0xff]  }
 0x27f   : > { %3251 = vmatpush2.bf16.msra.mxu0 %v5711_v13  ;;  %v5791_v13 = vld [vmem:[#allocation6 + $0x188] ss:$16 sps:$4 sm:$0xff]   ;;  %v5820_v30 = vld [vmem:[#allocation6 + $0x30c] ss:$16 sps:$4 sm:$0xff]  }
 0x280   : > { %3292 = vmatpush2.bf16.msra.mxu1 %v5712_v14  ;;  %3252 = vmatprep.subr.bf16.mxu0 %v5713_v15  ;;  %v5794_v14 = vld [vmem:[#allocation6 + $0x388] ss:$16 sps:$4 sm:$0xff]   ;;  %v5799_v15 = vld [vmem:[#allocation6 + $0x16c] ss:$16 sps:$4 sm:$0xff]  }
 0x281   : > { %3293 = vmatprep.subr.bf16.mxu1 %v5715_v16  ;;  %v5802_v16 = vld [vmem:[#allocation6 + $0x36c] ss:$16 sps:$4 sm:$0xff]  }
 0x283   : > { %3253 = vmatpush2.bf16.msra.mxu0 %v5717_v19  ;;  %v5805_v19 = vld [vmem:[#allocation6 + $0x14c] ss:$16 sps:$4 sm:$0xff]  }
 0x284   : > { %3294 = vmatpush2.bf16.msra.mxu1 %v5718_v20  ;;  %3254 = vmatprep.subr.bf16.mxu0 %v5719_v23  ;;  %v5808_v20 = vld [vmem:[#allocation6 + $0x34c] ss:$16 sps:$4 sm:$0xff]   ;;  %v5803_v23 = vld [vmem:[#allocation6 + $0x148] ss:$16 sps:$4 sm:$0xff]  }
 0x285   : > { %3295 = vmatprep.subr.bf16.mxu1 %v5721_v26  ;;  %v5814_v26 = vld [vmem:[#allocation6 + $0x32c] ss:$16 sps:$4 sm:$0xff]  }
 0x287   : > { %3255 = vmatpush2.bf16.msra.mxu0 %v5723_v27  ;;  %v5809_v27 = vld [vmem:[#allocation6 + $0x128] ss:$16 sps:$4 sm:$0xff]  }
 0x288   : > { %3296 = vmatpush2.bf16.msra.mxu1 %v5724_v28  ;;  %3306 = vmatprep.subr.bf16.mxu0 %v5727_v31  ;;  %v5812_v28 = vld [vmem:[#allocation6 + $0x328] ss:$16 sps:$4 sm:$0xff]  }
 0x289   : > { %3347 = vmatprep.subr.bf16.mxu1 %v5730_v32  ;;  %v5815_v31 = vld [vmem:[#allocation6 + $0x108] ss:$16 sps:$4 sm:$0xff]  }
 0x28a   : > { %3257 = vmatmul.mubr.bf16.vlgmr.msra.gmra.mxu0 %v6783_v33  ;;  %v5818_v32 = vld [vmem:[#allocation6 + $0x308] ss:$16 sps:$4 sm:$0xff]  }
 0x28b   : > { %3298 = vmatmul.mubr.bf16.vlgmr.msra.gmra.mxu1 %v6785_v34  ;;  %3307 = vmatpush1.bf16.msra.mxu0 %v5725_v35  ;;  %v5823_v35 = vld [vmem:[#allocation9 + $0xe4] ss:$16 sps:$4 sm:$0xff]  }
 0x28c   : > { %3348 = vmatpush1.bf16.msra.mxu1 %v5728_v36  ;;  %3308 = vmatprep.subr.bf16.mxu0 %v5733_v11  ;;  %v5821_v36 = vld [vmem:[#allocation9 + $0xe0] ss:$16 sps:$4 sm:$0xff]   ;;  %v5826_v11 = vld [vmem:[#allocation9 + $0xc4] ss:$16 sps:$4 sm:$0xff]  }
 0x28d   : > { %3349 = vmatprep.subr.bf16.mxu1 %v5736_v12  ;;  %3338 = vmatprep.mubr.bf16.mxu0 %v6780_v4  ;;  %v5782_v4 = vld [vmem:[#allocation6 + $0x3c8] ss:$16 sps:$4 sm:$0xff]   ;;  %v5824_v12 = vld [vmem:[#allocation9 + $0xc0] ss:$16 sps:$4 sm:$0xff]  }
 0x28e   : > { %3379 = vmatprep.mubr.bf16.mxu1 %v2433_v7  ;;  %v5785_v7 = vld [vmem:[#allocation6 + $0x1a8] ss:$16 sps:$4 sm:$0xff]  }
 0x28f   : > { %3309 = vmatpush1.bf16.msra.mxu0 %v5731_v52  ;;  %v5829_v52 = vld [vmem:[#allocation9 + $0xa4] ss:$16 sps:$4 sm:$0xff]  }
 0x290   : > { %3350 = vmatpush1.bf16.msra.mxu1 %v5734_v56  ;;  %3310 = vmatprep.subr.bf16.mxu0 %v5739_v37  ;;  %v5827_v56 = vld [vmem:[#allocation9 + $0xa0] ss:$16 sps:$4 sm:$0xff]   ;;  %v5832_v37 = vld [vmem:[#allocation9 + $0x84] ss:$16 sps:$4 sm:$0xff]  }
 0x291   : > { %3351 = vmatprep.subr.bf16.mxu1 %v5742_v41  ;;  %v5830_v41 = vld [vmem:[#allocation9 + $0x80] ss:$16 sps:$4 sm:$0xff]  }
 0x293   : > { %3311 = vmatpush1.bf16.msra.mxu0 %v5737_v42  ;;  %v5835_v42 = vld [vmem:[#allocation9 + $0x64] ss:$16 sps:$4 sm:$0xff]  }
 0x294   : > { %3352 = vmatpush1.bf16.msra.mxu1 %v5740_v38  ;;  %3312 = vmatprep.subr.bf16.mxu0 %v5745_v39  ;;  %v5871_v38 = vld [vmem:[#allocation9 + $0x2e4] ss:$16 sps:$4 sm:$0xff]   ;;  %v5869_v39 = vld [vmem:[#allocation9 + $0x2e0] ss:$16 sps:$4 sm:$0xff]  }
 0x295   : > { %3353 = vmatprep.subr.bf16.mxu1 %v5748_v40  ;;  %v5833_v40 = vld [vmem:[#allocation9 + $0x60] ss:$16 sps:$4 sm:$0xff]  }
 0x297   : > { %3313 = vmatpush1.bf16.msra.mxu0 %v5743_v43  ;;  %v5877_v43 = vld [vmem:[#allocation9 + $0x2c4] ss:$16 sps:$4 sm:$0xff]  }
 0x298   : > { %3354 = vmatpush1.bf16.msra.mxu1 %v5746_v21  ;;  %3314 = vmatprep.subr.bf16.mxu0 %v5751_v44  ;;  %v5836_v21 = vld [vmem:[#allocation9 + $0x40] ss:$16 sps:$4 sm:$0xff]   ;;  %v5841_v44 = vld [vmem:[#allocation9 + $0x24] ss:$16 sps:$4 sm:$0xff]  }
 0x299   : > { %3355 = vmatprep.subr.bf16.mxu1 %v5754_v22  ;;  %v5881_v22 = vld [vmem:[#allocation9 + $0x2a0] ss:$16 sps:$4 sm:$0xff]  }
 0x29b   : > { %3315 = vmatpush1.bf16.msra.mxu0 %v5749_v45  ;;  %v5883_v45 = vld [vmem:[#allocation9 + $0x2a4] ss:$16 sps:$4 sm:$0xff]  }
 0x29c   : > { %3356 = vmatpush1.bf16.msra.mxu1 %v5752_v46  ;;  %3316 = vmatprep.subr.bf16.mxu0 %v5757_v47  ;;  %v5839_v46 = vld [vmem:[#allocation9 + $0x20] ss:$16 sps:$4 sm:$0xff]   ;;  %v5844_v47 = vld [vmem:[#allocation9 + $0x4] ss:$16 sps:$4 sm:$0xff]  }
 0x29d   : > { %3357 = vmatprep.subr.bf16.mxu1 %v5760_v48  ;;  %v5887_v48 = vld [vmem:[#allocation9 + $0x280] ss:$16 sps:$4 sm:$0xff]  }
 0x29f   : > { %3317 = vmatpush1.bf16.msra.mxu0 %v5755_v49  ;;  %v5889_v49 = vld [vmem:[#allocation9 + $0x284] ss:$16 sps:$4 sm:$0xff]  }
 0x2a0   : > { %3358 = vmatpush1.bf16.msra.mxu1 %v5758_v50  ;;  %3318 = vmatprep.subr.bf16.mxu0 %v5763_v51  ;;  %v5842_v50 = vld [vmem:[#allocation9] ss:$16 sps:$4 sm:$0xff]   ;;  %v5847_v51 = vld [vmem:[#allocation9 + $0x1e4] ss:$16 sps:$4 sm:$0xff]  }
 0x2a1   : > { %3359 = vmatprep.subr.bf16.mxu1 %v5766_v53  ;;  %v5893_v53 = vld [vmem:[#allocation9 + $0x260] ss:$16 sps:$4 sm:$0xff]  }
 0x2a3   : > { %3319 = vmatpush1.bf16.msra.mxu0 %v5761_v54  ;;  %v5895_v54 = vld [vmem:[#allocation9 + $0x264] ss:$16 sps:$4 sm:$0xff]  }
 0x2a4   : > { %3360 = vmatpush1.bf16.msra.mxu1 %v5764_v55  ;;  %3320 = vmatprep.subr.bf16.mxu0 %v5769_v57  ;;  %v5845_v55 = vld [vmem:[#allocation9 + $0x1e0] ss:$16 sps:$4 sm:$0xff]   ;;  %v5850_v57 = vld [vmem:[#allocation9 + $0x1c4] ss:$16 sps:$4 sm:$0xff]  }
 0x2a5   : > { %3361 = vmatprep.subr.bf16.mxu1 %v5772_v58  ;;  %v5899_v58 = vld [vmem:[#allocation9 + $0x240] ss:$16 sps:$4 sm:$0xff]  }
 0x2a7   : > { %3321 = vmatpush1.bf16.msra.mxu0 %v5767_v59  ;;  %v5901_v59 = vld [vmem:[#allocation9 + $0x244] ss:$16 sps:$4 sm:$0xff]  }
 0x2a8   : > { %3362 = vmatpush1.bf16.msra.mxu1 %v5770_v60  ;;  %3322 = vmatprep.subr.bf16.mxu0 %v5775_v61  ;;  %v5848_v60 = vld [vmem:[#allocation9 + $0x1c0] ss:$16 sps:$4 sm:$0xff]   ;;  %v5853_v61 = vld [vmem:[#allocation9 + $0x1a4] ss:$16 sps:$4 sm:$0xff]  }
 0x2a9   : > { %3363 = vmatprep.subr.bf16.mxu1 %v5778_v62  ;;  %v5905_v62 = vld [vmem:[#allocation9 + $0x220] ss:$16 sps:$4 sm:$0xff]  }
 0x2ab   : > { %3323 = vmatpush2.bf16.msra.mxu0 %v5773_v63  ;;  %v5907_v63 = vld [vmem:[#allocation9 + $0x224] ss:$16 sps:$4 sm:$0xff]  }
 0x2ac   : > { %3364 = vmatpush2.bf16.msra.mxu1 %v5776_v0  ;;  %3324 = vmatprep.subr.bf16.mxu0 %v5781_v1  ;;  %v5851_v0 = vld [vmem:[#allocation9 + $0x1a0] ss:$16 sps:$4 sm:$0xff]   ;;  %v5856_v1 = vld [vmem:[#allocation9 + $0x184] ss:$16 sps:$4 sm:$0xff]  }
 0x2ad   : > { %3365 = vmatprep.subr.bf16.mxu1 %v5784_v2  ;;  %v5911_v2 = vld [vmem:[#allocation9 + $0x200] ss:$16 sps:$4 sm:$0xff]  }
 0x2af   : > { %3325 = vmatpush2.bf16.msra.mxu0 %v5779_v3  ;;  %v5913_v3 = vld [vmem:[#allocation9 + $0x204] ss:$16 sps:$4 sm:$0xff]  }
 0x2b0   : > { %3366 = vmatpush2.bf16.msra.mxu1 %v5782_v4  ;;  %3326 = vmatprep.subr.bf16.mxu0 %v5787_v5  ;;  %v5854_v4 = vld [vmem:[#allocation9 + $0x180] ss:$16 sps:$4 sm:$0xff]   ;;  %v5859_v5 = vld [vmem:[#allocation9 + $0x164] ss:$16 sps:$4 sm:$0xff]  }
 0x2b1   : > { %3367 = vmatprep.subr.bf16.mxu1 %v5790_v6  ;;  %v5917_v6 = vld [vmem:[#allocation9 + $0x3e0] ss:$16 sps:$4 sm:$0xff]  }
 0x2b3   : > { %3327 = vmatpush2.bf16.msra.mxu0 %v5785_v7  ;;  %v5919_v7 = vld [vmem:[#allocation9 + $0x3e4] ss:$16 sps:$4 sm:$0xff]  }
 0x2b4   : > { %3368 = vmatpush2.bf16.msra.mxu1 %v5788_v8  ;;  %3328 = vmatprep.subr.bf16.mxu0 %v5793_v9  ;;  %v5857_v8 = vld [vmem:[#allocation9 + $0x160] ss:$16 sps:$4 sm:$0xff]   ;;  %v5862_v9 = vld [vmem:[#allocation9 + $0x144] ss:$16 sps:$4 sm:$0xff]  }
 0x2b5   : > { %3369 = vmatprep.subr.bf16.mxu1 %v5796_v10  ;;  %v5923_v10 = vld [vmem:[#allocation9 + $0x3c0] ss:$16 sps:$4 sm:$0xff]  }
 0x2b7   : > { %3329 = vmatpush2.bf16.msra.mxu0 %v5791_v13  ;;  %v5925_v13 = vld [vmem:[#allocation9 + $0x3c4] ss:$16 sps:$4 sm:$0xff]  }
 0x2b8   : > { %3370 = vmatpush2.bf16.msra.mxu1 %v5794_v14  ;;  %3330 = vmatprep.subr.bf16.mxu0 %v5799_v15  ;;  %v5860_v14 = vld [vmem:[#allocation9 + $0x140] ss:$16 sps:$4 sm:$0xff]   ;;  %v5865_v15 = vld [vmem:[#allocation9 + $0x124] ss:$16 sps:$4 sm:$0xff]  }
 0x2b9   : > { %3371 = vmatprep.subr.bf16.mxu1 %v5802_v16  ;;  %v5929_v16 = vld [vmem:[#allocation9 + $0x3a0] ss:$16 sps:$4 sm:$0xff]  }
 0x2bb   : > { %3331 = vmatpush2.bf16.msra.mxu0 %v5797_v17  ;;  %v5931_v17 = vld [vmem:[#allocation9 + $0x3a4] ss:$16 sps:$4 sm:$0xff]  }
 0x2bc   : > { %3372 = vmatpush2.bf16.msra.mxu1 %v5800_v18  ;;  %3332 = vmatprep.subr.bf16.mxu0 %v5805_v19  ;;  %v5863_v18 = vld [vmem:[#allocation9 + $0x120] ss:$16 sps:$4 sm:$0xff]   ;;  %v5868_v19 = vld [vmem:[#allocation9 + $0x104] ss:$16 sps:$4 sm:$0xff]  }
 0x2bd   : > { %3373 = vmatprep.subr.bf16.mxu1 %v5808_v20  ;;  %v5935_v20 = vld [vmem:[#allocation9 + $0x380] ss:$16 sps:$4 sm:$0xff]  }
 0x2bf   : > { %3333 = vmatpush2.bf16.msra.mxu0 %v5803_v23  ;;  %v5937_v23 = vld [vmem:[#allocation9 + $0x384] ss:$16 sps:$4 sm:$0xff]  }
 0x2c0   : > { %3374 = vmatpush2.bf16.msra.mxu1 %v5806_v24  ;;  %3334 = vmatprep.subr.bf16.mxu0 %v5811_v25  ;;  %v5866_v24 = vld [vmem:[#allocation9 + $0x100] ss:$16 sps:$4 sm:$0xff]   ;;  %v5874_v25 = vld [vmem:[#allocation9 + $0xec] ss:$16 sps:$4 sm:$0xff]  }
 0x2c1   : > { %3375 = vmatprep.subr.bf16.mxu1 %v5814_v26  ;;  %v5941_v26 = vld [vmem:[#allocation9 + $0x360] ss:$16 sps:$4 sm:$0xff]  }
 0x2c3   : > { %3335 = vmatpush2.bf16.msra.mxu0 %v5809_v27  ;;  %v5943_v27 = vld [vmem:[#allocation9 + $0x364] ss:$16 sps:$4 sm:$0xff]  }
 0x2c4   : > { %3376 = vmatpush2.bf16.msra.mxu1 %v5812_v28  ;;  %3336 = vmatprep.subr.bf16.mxu0 %v5817_v29  ;;  %v5949_v28 = vld [vmem:[#allocation9 + $0x344] ss:$16 sps:$4 sm:$0xff]   ;;  %v5947_v29 = vld [vmem:[#allocation9 + $0x340] ss:$16 sps:$4 sm:$0xff]  }
 0x2c5   : > { %3377 = vmatprep.subr.bf16.mxu1 %v5820_v30  ;;  %v5955_v30 = vld [vmem:[#allocation9 + $0x324] ss:$16 sps:$4 sm:$0xff]  }
 0x2c7   : > { %3337 = vmatpush2.bf16.msra.mxu0 %v5815_v31  ;;  %v5953_v31 = vld [vmem:[#allocation9 + $0x320] ss:$16 sps:$4 sm:$0xff]  }
 0x2c8   : > { %3378 = vmatpush2.bf16.msra.mxu1 %v5818_v32  ;;  %4194 = vmatprep.subr.bf16.mxu0 %v5823_v35  ;;  %v5961_v32 = vld [vmem:[#allocation9 + $0x304] ss:$16 sps:$4 sm:$0xff]   ;;  %v5959_v35 = vld [vmem:[#allocation9 + $0x300] ss:$16 sps:$4 sm:$0xff]  }
 0x2c9   : > { %4235 = vmatprep.subr.bf16.mxu1 %v5871_v38 }
 0x2ca   : > { %3339 = vmatmul.mubr.bf16.vlgmr.msra.gmra.mxu0 %v6783_v33  ;;  %v5838_v33 = vld [vmem:[#allocation9 + $0x44] ss:$16 sps:$4 sm:$0xff]  }
 0x2cb   : > { %3380 = vmatmul.mubr.bf16.vlgmr.msra.gmra.mxu1 %v6785_v34  ;;  %4195 = vmatpush1.bf16.msra.mxu0 %v5821_v36  ;;  %v5875_v34 = vld [vmem:[#allocation9 + $0x2c0] ss:$16 sps:$4 sm:$0xff]   ;;  %v5967_v36 = vld [vmem:[#allocation9 + $0x2ec] ss:$16 sps:$4 sm:$0xff]  }
 0x2cc   : > { %4196 = vmatprep.subr.bf16.mxu0 %v5826_v11  ;;  %4236 = vmatpush1.bf16.msra.mxu1 %v5869_v39  ;;  %v2564_v11 = vlaneseq }
 0x2cd   : > { %4237 = vmatprep.subr.bf16.mxu1 %v5877_v43 }
 0x2cf   : > { %4197 = vmatpush1.bf16.msra.mxu0 %v5824_v12  ;;  %v6792_v12 = vshrl.u32 %v2564_v11, 7 }
 0x2d0   : > { %4198 = vmatprep.subr.bf16.mxu0 %v5829_v52  ;;  %4238 = vmatpush1.bf16.msra.mxu1 %v5875_v34 }
 0x2d1   : > { %4239 = vmatprep.subr.bf16.mxu1 %v5883_v45  ;;  %v6795_v52 = vsub.s32 0, %v6792_v12 }
 0x2d3   : > { %4199 = vmatpush1.bf16.msra.mxu0 %v5827_v56  ;;  %v6797_v56 = vld [vmem:[#allocation8] sm:$0xf] }
 0x2d4   : > { %4200 = vmatprep.subr.bf16.mxu0 %v5832_v37  ;;  %4240 = vmatpush1.bf16.msra.mxu1 %v5881_v22  ;;  %v2570_v37 = vsub.s32 1, %v6792_v12 }
 0x2d5   : > { %4241 = vmatprep.subr.bf16.mxu1 %v5889_v49 }
 0x2d7   : > { %4201 = vmatpush1.bf16.msra.mxu0 %v5830_v41  ;;  %v2567_v41 = vrot.slane %v6797_v56, %v6795_v52 }
 0x2d8   : > { %4202 = vmatprep.subr.bf16.mxu0 %v5835_v42  ;;  %4242 = vmatpush1.bf16.msra.mxu1 %v5887_v48  ;;  %v2571_v42 = vrot.slane %v6797_v56, %v2570_v37 }
 0x2d9   : > { %4243 = vmatprep.subr.bf16.mxu1 %v5895_v54  ;;  %v5872_v54 = vld [vmem:[#allocation9 + $0xe8] ss:$16 sps:$4 sm:$0xff]  }
 0x2db   : > { %4203 = vmatpush1.bf16.msra.mxu0 %v5833_v40 }
 0x2dc   : > { %4204 = vmatprep.subr.bf16.mxu0 %v5838_v33  ;;  %4244 = vmatpush1.bf16.msra.mxu1 %v5893_v53 }
 0x2dd   : > { %4245 = vmatprep.subr.bf16.mxu1 %v5901_v59  ;;  %v5886_v59 = vld [vmem:[#allocation9 + $0xac] ss:$16 sps:$4 sm:$0xff]  }
 0x2df   : > { %4205 = vmatpush1.bf16.msra.mxu0 %v5836_v21 }
 0x2e0   : > { %4206 = vmatprep.subr.bf16.mxu0 %v5841_v44  ;;  %4246 = vmatpush1.bf16.msra.mxu1 %v5899_v58  ;;  %v5878_v58 = vld [vmem:[#allocation9 + $0xc8] ss:$16 sps:$4 sm:$0xff]  }
 0x2e1   : > { %4247 = vmatprep.subr.bf16.mxu1 %v5907_v63  ;;  %v5898_v63 = vld [vmem:[#allocation9 + $0x6c] ss:$16 sps:$4 sm:$0xff]  }
 0x2e3   : > { %4207 = vmatpush1.bf16.msra.mxu0 %v5839_v46 }
 0x2e4   : > { %4208 = vmatprep.subr.bf16.mxu0 %v5844_v47  ;;  %4248 = vmatpush1.bf16.msra.mxu1 %v5905_v62  ;;  %v5890_v62 = vld [vmem:[#allocation9 + $0x88] ss:$16 sps:$4 sm:$0xff]  }
 0x2e5   : > { %4249 = vmatprep.subr.bf16.mxu1 %v5913_v3  ;;  %v5910_v3 = vld [vmem:[#allocation9 + $0x2c] ss:$16 sps:$4 sm:$0xff]  }
 0x2e7   : > { %4209 = vmatpush1.bf16.msra.mxu0 %v5842_v50 }
 0x2e8   : > { %4210 = vmatprep.subr.bf16.mxu0 %v5847_v51  ;;  %4250 = vmatpush1.bf16.msra.mxu1 %v5911_v2  ;;  %v5902_v2 = vld [vmem:[#allocation9 + $0x48] ss:$16 sps:$4 sm:$0xff]  }
 0x2e9   : > { %4251 = vmatprep.subr.bf16.mxu1 %v5919_v7  ;;  %v5922_v7 = vld [vmem:[#allocation9 + $0x1ec] ss:$16 sps:$4 sm:$0xff]  }
 0x2eb   : > { %4211 = vmatpush2.bf16.msra.mxu0 %v5845_v55 }
 0x2ec   : > { %4212 = vmatprep.subr.bf16.mxu0 %v5850_v57  ;;  %4252 = vmatpush2.bf16.msra.mxu1 %v5917_v6  ;;  %v5880_v57 = vld [vmem:[#allocation9 + $0xcc] ss:$16 sps:$4 sm:$0xff]   ;;  %v5914_v6 = vld [vmem:[#allocation9 + $0x8] ss:$16 sps:$4 sm:$0xff]  }
 0x2ed   : > { %4253 = vmatprep.subr.bf16.mxu1 %v5925_v13  ;;  %v5934_v13 = vld [vmem:[#allocation9 + $0x1ac] ss:$16 sps:$4 sm:$0xff]  }
 0x2ef   : > { %4213 = vmatpush2.bf16.msra.mxu0 %v5848_v60  ;;  %v5884_v60 = vld [vmem:[#allocation9 + $0xa8] ss:$16 sps:$4 sm:$0xff]  }
 0x2f0   : > { %4214 = vmatprep.subr.bf16.mxu0 %v5853_v61  ;;  %4254 = vmatpush2.bf16.msra.mxu1 %v5923_v10  ;;  %v5892_v61 = vld [vmem:[#allocation9 + $0x8c] ss:$16 sps:$4 sm:$0xff]   ;;  %v5926_v10 = vld [vmem:[#allocation9 + $0x1c8] ss:$16 sps:$4 sm:$0xff]  }
 0x2f1   : > { %4255 = vmatprep.subr.bf16.mxu1 %v5931_v17  ;;  %v5946_v17 = vld [vmem:[#allocation9 + $0x16c] ss:$16 sps:$4 sm:$0xff]  }
 0x2f3   : > { %4215 = vmatpush2.bf16.msra.mxu0 %v5851_v0  ;;  %v5896_v0 = vld [vmem:[#allocation9 + $0x68] ss:$16 sps:$4 sm:$0xff]  }
 0x2f4   : > { %4216 = vmatprep.subr.bf16.mxu0 %v5856_v1  ;;  %4256 = vmatpush2.bf16.msra.mxu1 %v5929_v16  ;;  %v5904_v1 = vld [vmem:[#allocation9 + $0x4c] ss:$16 sps:$4 sm:$0xff]   ;;  %v5938_v16 = vld [vmem:[#allocation9 + $0x188] ss:$16 sps:$4 sm:$0xff]  }
 0x2f5   : > { %4257 = vmatprep.subr.bf16.mxu1 %v5937_v23  ;;  %v2578_v23 = vsub.s32 3, %v6792_v12 }
 0x2f7   : > { %4217 = vmatpush2.bf16.msra.mxu0 %v5854_v4  ;;  %v5908_v4 = vld [vmem:[#allocation9 + $0x28] ss:$16 sps:$4 sm:$0xff]  }
 0x2f8   : > { %4218 = vmatprep.subr.bf16.mxu0 %v5859_v5  ;;  %4258 = vmatpush2.bf16.msra.mxu1 %v5935_v20  ;;  %v5916_v5 = vld [vmem:[#allocation9 + $0xc] ss:$16 sps:$4 sm:$0xff]  }
 0x2f9   : > { %4259 = vmatprep.subr.bf16.mxu1 %v5943_v27  ;;  %v5952_v20 = vld [vmem:[#allocation9 + $0x14c] ss:$16 sps:$4 sm:$0xff]  }
 0x2fa   : > { %v5958_v27 = vld [vmem:[#allocation9 + $0x12c] ss:$16 sps:$4 sm:$0xff]  }
 0x2fb   : > { %4219 = vmatpush2.bf16.msra.mxu0 %v5857_v8  ;;  %v5920_v8 = vld [vmem:[#allocation9 + $0x1e8] ss:$16 sps:$4 sm:$0xff]  }
 0x2fc   : > { %4220 = vmatprep.subr.bf16.mxu0 %v5862_v9  ;;  %4260 = vmatpush2.bf16.msra.mxu1 %v5941_v26  ;;  %v5928_v9 = vld [vmem:[#allocation9 + $0x1cc] ss:$16 sps:$4 sm:$0xff]   ;;  %v2579_v26 = vrot.slane %v6797_v56, %v2578_v23 }
 0x2fd   : > { %4261 = vmatprep.subr.bf16.mxu1 %v5949_v28 }
 0x2ff   : > { %4221 = vmatpush2.bf16.msra.mxu0 %v5860_v14  ;;  %v5932_v14 = vld [vmem:[#allocation9 + $0x1a8] ss:$16 sps:$4 sm:$0xff]  }
 0x300   : > { %4222 = vmatprep.subr.bf16.mxu0 %v5865_v15  ;;  %4262 = vmatpush2.bf16.msra.mxu1 %v5947_v29  ;;  %v5940_v15 = vld [vmem:[#allocation9 + $0x18c] ss:$16 sps:$4 sm:$0xff]  }
 0x301   : > { %4263 = vmatprep.subr.bf16.mxu1 %v5955_v30 }
 0x303   : > { %4223 = vmatpush2.bf16.msra.mxu0 %v5863_v18  ;;  %v6809_v18 = vsub.s32 2, %v6792_v12 }
 0x304   : > { %4224 = vmatprep.subr.bf16.mxu0 %v5868_v19  ;;  %4264 = vmatpush2.bf16.msra.mxu1 %v5953_v31  ;;  %v5944_v19 = vld [vmem:[#allocation9 + $0x168] ss:$16 sps:$4 sm:$0xff]  }
 0x305   : > { %4265 = vmatprep.subr.bf16.mxu1 %v5961_v32 }
 0x307   : > { %4225 = vmatpush2.bf16.msra.mxu0 %v5866_v24  ;;  %v2575_v24 = vrot.slane %v6797_v56, %v6809_v18 }
 0x308   : > { %4276 = vmatprep.subr.bf16.mxu0 %v5874_v25  ;;  %4266 = vmatpush2.bf16.msra.mxu1 %v5959_v35  ;;  %v5950_v25 = vld [vmem:[#allocation9 + $0x148] ss:$16 sps:$4 sm:$0xff]  }
 0x309   : > { %4317 = vmatprep.subr.bf16.mxu1 %v5967_v36  ;;  %v5956_v35 = vld [vmem:[#allocation9 + $0x128] ss:$16 sps:$4 sm:$0xff]  }
 0x34a   : > { %v3258_v38 = vpop.f32.mrf.mxu0 }
 0x34b   : > { %v3299_v39 = vpop.f32.mrf.mxu1  ;;  %v3259_v40 = vadd.f32 %v3258_v38, %v2567_v41  ;;  %v5964_v41 = vld [vmem:[#allocation9 + $0x10c] ss:$16 sps:$4 sm:$0xff]  }
 0x34c   : > { %v3260_v33 = vpop.f32.mrf.mxu0 }
 0x34d   : > { %v3301_v34 = vpop.f32.mrf.mxu1  ;;  %v3300_v43 = vadd.f32 %v3299_v39, %v3259_v40  ;;  %v3261_v21 = vadd.f32 %v3260_v33, %v2571_v42 }
 0x34e   : > { %v3262_v44 = vpop.f32.mrf.mxu0 }
 0x34f   : > { %v3303_v22 = vpop.f32.mrf.mxu1  ;;  %vm3388_vm4 = vcmp.gt.f32.partialorder %v3300_v43, 0.0  ;;  %v3392_v45 = vmul.f32 0.2, %v3300_v43  ;;  %v3302_v46 = vadd.f32 %v3301_v34, %v3261_v21  ;;  %v5962_v34 = vld [vmem:[#allocation9 + $0x108] ss:$16 sps:$4 sm:$0xff]  }
 0x350   : > { %v3263_v47 = vpop.f32.mrf.mxu0 }
 0x351   : > { %v3304_v48 = vpop.f32.mrf.mxu1  ;;  %vm3389_vm5 = vcmp.gt.f32.partialorder %v3302_v46, 0.0  ;;  %v3393_v49 = vmul.f32 0.2, %v3302_v46  ;;  %v3396_v50 = vsel %vm3388_vm4, %v3300_v43, %v3392_v45  ;;  %v5965_v45 = vld [vmem:[#allocation9 + $0x2e8] ss:$16 sps:$4 sm:$0xff]  }
 0x352   : > { %v6805_v55 = vpack.c.bf16 %v3396_v50, %v3396_v50  ;;  %v5970_v47 = vld [vmem:[#allocation9 + $0x2cc] ss:$16 sps:$4 sm:$0xff]   ;;  %v5968_v48 = vld [vmem:[#allocation9 + $0x2c8] ss:$16 sps:$4 sm:$0xff]  }
 0x353   : > { %v3397_v51 = vsel %vm3389_vm5, %v3302_v46, %v3393_v49  ;;  %v5973_v49 = vld [vmem:[#allocation9 + $0x2ac] ss:$16 sps:$4 sm:$0xff]   ;;  %v5971_v50 = vld [vmem:[#allocation9 + $0x2a8] ss:$16 sps:$4 sm:$0xff]  }
 0x354   : > { %v3401_v53 = vpack.c.bf16 %v3397_v51, %v3397_v51  ;;  %v5976_v51 = vld [vmem:[#allocation9 + $0x28c] ss:$16 sps:$4 sm:$0xff]  }
 0x356   : > { %4226 = vmatprep.mubr.bf16.mxu0 %v3401_v53 }
 0x357   : > { %4227 = vmatmul.mubr.bf16.vlgmr.msra.gmra.mxu0 %v6805_v55 }
 0x358   : > { %4277 = vmatpush1.bf16.msra.mxu0 %v5872_v54  ;;  %4308 = vmatprep.mubr.bf16.mxu0 %v3401_v53  ;;  %v5974_v53 = vld [vmem:[#allocation9 + $0x288] ss:$16 sps:$4 sm:$0xff]   ;;  %v5979_v54 = vld [vmem:[#allocation9 + $0x26c] ss:$16 sps:$4 sm:$0xff]  }
 0x359   : > { %4278 = vmatprep.subr.bf16.mxu0 %v5880_v57  ;;  %v5977_v57 = vld [vmem:[#allocation9 + $0x268] ss:$16 sps:$4 sm:$0xff]  }
 0x35c   : > { %4279 = vmatpush1.bf16.msra.mxu0 %v5878_v58  ;;  %v5982_v58 = vld [vmem:[#allocation9 + $0x24c] ss:$16 sps:$4 sm:$0xff]  }
 0x35d   : > { %4280 = vmatprep.subr.bf16.mxu0 %v5886_v59  ;;  %v5985_v59 = vld [vmem:[#allocation9 + $0x22c] ss:$16 sps:$4 sm:$0xff]  }
 0x360   : > { %4281 = vmatpush1.bf16.msra.mxu0 %v5884_v60  ;;  %v5983_v60 = vld [vmem:[#allocation9 + $0x228] ss:$16 sps:$4 sm:$0xff]  }
 0x361   : > { %4282 = vmatprep.subr.bf16.mxu0 %v5892_v61  ;;  %v5988_v61 = vld [vmem:[#allocation9 + $0x20c] ss:$16 sps:$4 sm:$0xff]  }
 0x364   : > { %4283 = vmatpush1.bf16.msra.mxu0 %v5890_v62  ;;  %v5986_v62 = vld [vmem:[#allocation9 + $0x208] ss:$16 sps:$4 sm:$0xff]  }
 0x365   : > { %4284 = vmatprep.subr.bf16.mxu0 %v5898_v63  ;;  %v5991_v63 = vld [vmem:[#allocation9 + $0x3ec] ss:$16 sps:$4 sm:$0xff]  }
 0x368   : > { %4285 = vmatpush1.bf16.msra.mxu0 %v5896_v0  ;;  %v5989_v0 = vld [vmem:[#allocation9 + $0x3e8] ss:$16 sps:$4 sm:$0xff]  }
 0x369   : > { %4286 = vmatprep.subr.bf16.mxu0 %v5904_v1  ;;  %v5994_v1 = vld [vmem:[#allocation9 + $0x3cc] ss:$16 sps:$4 sm:$0xff]  }
 0x36c   : > { %4287 = vmatpush1.bf16.msra.mxu0 %v5902_v2  ;;  %v5992_v2 = vld [vmem:[#allocation9 + $0x3c8] ss:$16 sps:$4 sm:$0xff]  }
 0x36d   : > { %4288 = vmatprep.subr.bf16.mxu0 %v5910_v3  ;;  %v5997_v3 = vld [vmem:[#allocation9 + $0x3ac] ss:$16 sps:$4 sm:$0xff]  }
 0x370   : > { %4289 = vmatpush1.bf16.msra.mxu0 %v5908_v4  ;;  %v5995_v4 = vld [vmem:[#allocation9 + $0x3a8] ss:$16 sps:$4 sm:$0xff]  }
 0x371   : > { %4290 = vmatprep.subr.bf16.mxu0 %v5916_v5  ;;  %v6000_v5 = vld [vmem:[#allocation9 + $0x38c] ss:$16 sps:$4 sm:$0xff]  }
 0x374   : > { %4291 = vmatpush1.bf16.msra.mxu0 %v5914_v6  ;;  %v5998_v6 = vld [vmem:[#allocation9 + $0x388] ss:$16 sps:$4 sm:$0xff]  }
 0x375   : > { %4292 = vmatprep.subr.bf16.mxu0 %v5922_v7  ;;  %v6003_v7 = vld [vmem:[#allocation9 + $0x36c] ss:$16 sps:$4 sm:$0xff]  }
 0x378   : > { %4293 = vmatpush2.bf16.msra.mxu0 %v5920_v8  ;;  %v6001_v8 = vld [vmem:[#allocation9 + $0x368] ss:$16 sps:$4 sm:$0xff]  }
 0x379   : > { %4294 = vmatprep.subr.bf16.mxu0 %v5928_v9  ;;  %v6006_v9 = vld [vmem:[#allocation9 + $0x34c] ss:$16 sps:$4 sm:$0xff]  }
 0x37c   : > { %4295 = vmatpush2.bf16.msra.mxu0 %v5926_v10  ;;  %v6004_v10 = vld [vmem:[#allocation9 + $0x348] ss:$16 sps:$4 sm:$0xff]  }
 0x37d   : > { %4296 = vmatprep.subr.bf16.mxu0 %v5934_v13  ;;  %v6009_v13 = vld [vmem:[#allocation9 + $0x32c] ss:$16 sps:$4 sm:$0xff]  }
 0x380   : > { %4297 = vmatpush2.bf16.msra.mxu0 %v5932_v14  ;;  %v6007_v14 = vld [vmem:[#allocation9 + $0x328] ss:$16 sps:$4 sm:$0xff]  }
 0x381   : > { %4298 = vmatprep.subr.bf16.mxu0 %v5940_v15  ;;  %v6012_v15 = vld [vmem:[#allocation9 + $0x30c] ss:$16 sps:$4 sm:$0xff]  }
 0x384   : > { %4299 = vmatpush2.bf16.msra.mxu0 %v5938_v16  ;;  %v6010_v16 = vld [vmem:[#allocation9 + $0x308] ss:$16 sps:$4 sm:$0xff]  }
 0x385   : > { %4300 = vmatprep.subr.bf16.mxu0 %v5946_v17 }
 0x388   : > { %4301 = vmatpush2.bf16.msra.mxu0 %v5944_v19 }
 0x389   : > { %4302 = vmatprep.subr.bf16.mxu0 %v5952_v20 }
 0x38a   : > { %v3340_v28 = vpop.f32.mrf.mxu0 }
 0x38b   : > { %v3381_v29 = vpop.f32.mrf.mxu1  ;;  %v3341_v30 = vadd.f32 %v3340_v28, %v2575_v24 }
 0x38c   : > { %4303 = vmatpush2.bf16.msra.mxu0 %v5950_v25  ;;  %v3342_v31 = vpop.f32.mrf.mxu0  ;;  %v3532_v25 = vld [vmem:[#allocation11] sm:$0xf] }
 0x38d   : > { %v3383_v32 = vpop.f32.mrf.mxu1  ;;  %v3382_v36 = vadd.f32 %v3381_v29, %v3341_v30  ;;  %v3343_v11 = vadd.f32 %v3342_v31, %v2579_v26  ;;  %4304 = vmatprep.subr.bf16.mxu0 %v5958_v27  ;;  %v4370_v26 = vld [vmem:[#allocation12] sm:$0xf]  ;;  %v3537_v27 = vrot.slane %v3532_v25, %v6795_v52  ;;  %v3541_v29 = vrot.slane %v3532_v25, %v2570_v37 }
 0x38e   : > { %v3344_v42 = vpop.f32.mrf.mxu0  ;;  %v4371_v28 = vunpack.c.l.bf16 %v4370_v26 }
 0x38f   : > { %v3385_v38 = vpop.f32.mrf.mxu1  ;;  %vm3390_vm6 = vcmp.gt.f32.partialorder %v3382_v36, 0.0  ;;  %v3394_v39 = vmul.f32 0.2, %v3382_v36  ;;  %v3384_v40 = vadd.f32 %v3383_v32, %v3343_v11 }
 0x390   : > { %4305 = vmatpush2.bf16.msra.mxu0 %v5956_v35  ;;  %v3345_v33 = vpop.f32.mrf.mxu0  ;;  %v4376_v35 = vrot.slane %v4371_v28, %v6795_v52 }
 0x391   : > { %v3386_v56 = vpop.f32.mrf.mxu1  ;;  %vm3391_vm7 = vcmp.gt.f32.partialorder %v3384_v40, 0.0  ;;  %v3395_v43 = vmul.f32 0.2, %v3384_v40  ;;  %4306 = vmatprep.subr.bf16.mxu0 %v5964_v41  ;;  %v3398_v21 = vsel %vm3390_vm6, %v3382_v36, %v3394_v39  ;;  %v4380_v36 = vrot.slane %v4371_v28, %v6809_v18 }
 0x392   : > { %v6817_v46 = vpack.c.bf16 %v3398_v21, %v3398_v21 }
 0x393   : > { %v3399_v44 = vsel %vm3391_vm7, %v3384_v40, %v3395_v43  ;;  %v4400_v37 = vrot.slane %v4380_v36, %v6795_v52 }
 0x394   : > { %4307 = vmatpush2.bf16.msra.mxu0 %v5962_v34  ;;  %v3403_v22 = vpack.c.bf16 %v3399_v44, %v3399_v44  ;;  %v4396_v34 = vrot.slane %v4376_v35, %v6795_v52 }
 0x396   : > { %4267 = vmatprep.mubr.bf16.mxu1 %v3403_v22 }
 0x397   : > { %4309 = vmatmul.mubr.bf16.vlgmr.msra.gmra.mxu0 %v6805_v55  ;;  %4268 = vmatmul.mubr.bf16.vlgmr.msra.gmra.mxu1 %v6817_v46  ;;  %v5980_v55 = vld [vmem:[#allocation9 + $0x248] ss:$16 sps:$4 sm:$0xff]  }
 0x398   : > { %4318 = vmatpush1.bf16.msra.mxu1 %v5965_v45  ;;  %4349 = vmatprep.mubr.bf16.mxu1 %v3403_v22 }
 0x399   : > { %4319 = vmatprep.subr.bf16.mxu1 %v5970_v47 }
 0x39c   : > { %4320 = vmatpush1.bf16.msra.mxu1 %v5968_v48 }
 0x39d   : > { %4321 = vmatprep.subr.bf16.mxu1 %v5973_v49  ;;  %v4383_v49 = vsub.s32 4, %v6792_v12 }
 0x3a0   : > { %4322 = vmatpush1.bf16.msra.mxu1 %v5971_v50  ;;  %v3545_v50 = vrot.slane %v3532_v25, %v6809_v18 }
 0x3a1   : > { %4323 = vmatprep.subr.bf16.mxu1 %v5976_v51  ;;  %v4387_v51 = vsub.s32 6, %v6792_v12 }
 0x3a4   : > { %4324 = vmatpush1.bf16.msra.mxu1 %v5974_v53  ;;  %v3549_v53 = vrot.slane %v3532_v25, %v2578_v23 }
 0x3a5   : > { %4325 = vmatprep.subr.bf16.mxu1 %v5979_v54  ;;  %v4384_v54 = vrot.slane %v4371_v28, %v4383_v49 }
 0x3a8   : > { %4326 = vmatpush1.bf16.msra.mxu1 %v5977_v57 }
 0x3a9   : > { %4327 = vmatprep.subr.bf16.mxu1 %v5982_v58 }
 0x3ac   : > { %4328 = vmatpush1.bf16.msra.mxu1 %v5980_v55  ;;  %v4388_v55 = vrot.slane %v4371_v28, %v4387_v51 }
 0x3ad   : > { %4329 = vmatprep.subr.bf16.mxu1 %v5985_v59 }
 0x3ae   : > { %v4408_v18 = vrot.slane %v4388_v55, %v6795_v52 }
 0x3b0   : > { %4330 = vmatpush1.bf16.msra.mxu1 %v5983_v60 }
 0x3b1   : > { %4331 = vmatprep.subr.bf16.mxu1 %v5988_v61 }
 0x3b4   : > { %4332 = vmatpush1.bf16.msra.mxu1 %v5986_v62  ;;  %v4404_v62 = vrot.slane %v4384_v54, %v6795_v52 }
 0x3b5   : > { %4333 = vmatprep.subr.bf16.mxu1 %v5991_v63 }
 0x3b8   : > { %4334 = vmatpush2.bf16.msra.mxu1 %v5989_v0 }
 0x3b9   : > { %4335 = vmatprep.subr.bf16.mxu1 %v5994_v1 }
 0x3bc   : > { %4336 = vmatpush2.bf16.msra.mxu1 %v5992_v2 }
 0x3bd   : > { %4337 = vmatprep.subr.bf16.mxu1 %v5997_v3 }
 0x3c0   : > { %4338 = vmatpush2.bf16.msra.mxu1 %v5995_v4 }
 0x3c1   : > { %4339 = vmatprep.subr.bf16.mxu1 %v6000_v5 }
 0x3c4   : > { %4340 = vmatpush2.bf16.msra.mxu1 %v5998_v6 }
 0x3c5   : > { %4341 = vmatprep.subr.bf16.mxu1 %v6003_v7 }
 0x3c8   : > { %4342 = vmatpush2.bf16.msra.mxu1 %v6001_v8  ;;  %v5123_v8 = vld [vmem:[#allocation3] ss:$0 sm:$0xff] }
 0x3c9   : > { %4343 = vmatprep.subr.bf16.mxu1 %v6006_v9 }
 0x3cc   : > { %4344 = vmatpush2.bf16.msra.mxu1 %v6004_v10 }
 0x3cd   : > { %4345 = vmatprep.subr.bf16.mxu1 %v6009_v13 }
 0x3d0   : > { %4346 = vmatpush2.bf16.msra.mxu1 %v6007_v14 }
 0x3d1   : > { %4347 = vmatprep.subr.bf16.mxu1 %v6012_v15 }
 0x3d4   : > { %4348 = vmatpush2.bf16.msra.mxu1 %v6010_v16 }
 0x3d7   : > { %4350 = vmatmul.mubr.bf16.vlgmr.msra.gmra.mxu1 %v6817_v46 }
 0x417   : > { %v4228_v17 = vpop.f32.mrf.mxu0 }
 0x418   : > { %v4229_v30 = vadd.f32 %v4228_v17, %v3537_v27 }
 0x419   : > { %v4230_v19 = vpop.f32.mrf.mxu0 }
 0x41a   : > { %v4231_v11 = vadd.f32 %v4230_v19, %v3541_v29 }
 0x41b   : > { %v4232_v20 = vpop.f32.mrf.mxu0 }
 0x41d   : > { %v4233_v24 = vpop.f32.mrf.mxu0 }
 0x457   : > { %v4310_v31 = vpop.f32.mrf.mxu0  ;;  %v4269_v32 = vpop.f32.mrf.mxu1 }
 0x458   : > { %v4270_v41 = vadd.f32 %v4269_v32, %v4229_v30  ;;  %v4311_v57 = vadd.f32 %v4310_v31, %v3545_v50 }
 0x459   : > { %v4312_v42 = vpop.f32.mrf.mxu0  ;;  %v4271_v38 = vpop.f32.mrf.mxu1 }
 0x45a   : > { %vm4358_vm8 = vcmp.gt.f32.partialorder %v4270_v41, 0.0  ;;  %v4362_v39 = vmul.f32 0.2, %v4270_v41  ;;  %v4272_v40 = vadd.f32 %v4271_v38, %v4231_v11  ;;  %v4313_v59 = vadd.f32 %v4312_v42, %v3549_v53 }
 0x45b   : > { %v4314_v33 = vpop.f32.mrf.mxu0  ;;  %v4273_v56 = vpop.f32.mrf.mxu1 }
 0x45c   : > { %v4366_v43 = vsel %vm4358_vm8, %v4270_v41, %v4362_v39  ;;  %vm4359_vm9 = vcmp.gt.f32.partialorder %v4272_v40, 0.0  ;;  %v4363_v21 = vmul.f32 0.2, %v4272_v40 }
 0x45d   : > { %v4315_v44 = vpop.f32.mrf.mxu0  ;;  %v4274_v22 = vpop.f32.mrf.mxu1  ;;  %v4409_v46 = vmul.f32 %v4396_v34, %v4366_v43 }
 0x45e   : > { %v4367_v45 = vsel %vm4359_vm9, %v4272_v40, %v4363_v21 }
 0x45f   : > { %v4410_v47 = vmul.f32 %v4400_v37, %v4367_v45 }
 0x461   : > { %v4413_v48 = vadd.f32 %v4410_v47, %v4409_v46 }
 0x497   : > { %v4351_v58 = vpop.f32.mrf.mxu1 }
 0x498   : > { %v4352_v60 = vadd.f32 %v4351_v58, %v4311_v57 }
 0x499   : > { %v4353_v61 = vpop.f32.mrf.mxu1 }
 0x49a   : > { %vm4360_vm10 = vcmp.gt.f32.partialorder %v4352_v60, 0.0  ;;  %v4364_v63 = vmul.f32 0.2, %v4352_v60  ;;  %v4354_v0 = vadd.f32 %v4353_v61, %v4313_v59 }
 0x49b   : > { %v4355_v1 = vpop.f32.mrf.mxu1 }
 0x49c   : > { %vm4361_vm11 = vcmp.gt.f32.partialorder %v4354_v0, 0.0  ;;  %v4365_v2 = vmul.f32 0.2, %v4354_v0  ;;  %v4368_v3 = vsel %vm4360_vm10, %v4352_v60, %v4364_v63 }
 0x49d   : > { %v4356_v12 = vpop.f32.mrf.mxu1  ;;  %v4411_v23 = vmul.f32 %v4404_v62, %v4368_v3 }
 0x49e   : > { %v4369_v4 = vsel %vm4361_vm11, %v4354_v0, %v4365_v2 }
 0x49f   : > { %v4412_v5 = vmul.f32 %v4408_v18, %v4369_v4  ;;  %v4414_v6 = vadd.f32 %v4413_v48, %v4411_v23 }
 0x4a1   : > { %v4415_v7 = vadd.f32 %v4414_v6, %v4412_v5 }
 0x4a3   : > { %4416 = vadd.xlane.f32.xlu0 %v4415_v7 }
 0x52c   : > { %v4417_v9 = vpop.xlane.xlu0 %4416 }
 0x52d   : > { %v4425_v10 = vadd.f32 %v5123_v8, %v4417_v9 }
 0x52f   : > { %4427 = vst.msk [vmem:[%s6866_s9] sm:$0xff] %vm4426_vm12, %v4425_v10 }
 0x530 PF: > { %s27_s16 = sadd.s32 1, %s6233_s16   ;;  %s6888_s11 = smov %s6217_s12 }
 0x531   : > { %p24_p5 = scmp.ge.s32.totalorder %s27_s16, 6   ;;  %s6889_s12 = smov %s6221_s13 }
 0x532   : > { %s6890_s13 = smov %s6417_s22  ;;  %s6891_s14 = smov %s6229_s15 }
 0x533   : > { %s6892_s15 = smov %s6894_s26  ;;  %26 = sbr.rel (!%p24_p5) target bundleno = 10 (0xa), region = 130 }
 0x538   :  { %4447 = vsyncpa [#allocation5], 1 }
 0x539   :  { %4449 = vsyncpa [#allocation5 + $0x1], 1 }
 0x53a   :  { %4450 = vsyncpa [#allocation7], 1 }
 0x53b   :  { %4451 = vsyncpa [#allocation10], 1 }
 0x53c   :  { %4452 = vsyncpa [#allocation13], 1 }

</bundles_post_ra>
